<compile_context>
chip_gen: v5e
topology: v5e:2x2
jax: 0.10.0
libtpu: 0.0.40
codegen_flags: <defaults>
</compile_context>

<pallas_src>
import jax
import jax.numpy as jnp
import numpy as np
from jax.experimental import pallas as pl
from jax.experimental.pallas import tpu as pltpu

LN_EPS = 1e-5          # nn.LayerNorm default
HEAD_HID = 256         # actor/critic fc1 width
PROB_LANES = 128       # lane-dense output slab width (action_dim must be <= 128)


def _layernorm(x, gamma, beta):
    mean = jnp.mean(x, axis=-1, keepdims=True)
    var = jnp.mean((x - mean) ** 2, axis=-1, keepdims=True)
    return (x - mean) * jax.lax.rsqrt(var + LN_EPS) * gamma + beta


def _tac_kernel(x_ref, wattn_ref, lvec_ref, wff_ref, b1_ref,
                hw1_ref, hbias_ref, aw2p_ref, out_ref):
    bf = jnp.bfloat16
    f32 = jnp.float32
    E = x_ref.shape[1]
    L = wattn_ref.shape[0]

    x = x_ref[...]                                                # (SUB, E) f32

    # ----- encoder layers (statically unrolled; all weights already in VMEM) ----
    for l in range(L):
        # degenerate seq-len-1 self-attention, offline-fused: x @ (Wv@Wo) + b_attn
        sa = jnp.dot(x.astype(bf), wattn_ref[l],
                     preferred_element_type=f32) + lvec_ref[l, 0:1, :]
        x = _layernorm(x + sa, lvec_ref[l, 1:2, :], lvec_ref[l, 2:3, :])

        # feed-forward: Linear(E->FF) -> ReLU -> Linear(FF->E)
        w1 = wff_ref[l, 0:E, :]                                   # (E, FF) bf16
        w2t = wff_ref[l, E:2 * E, :]                              # (E, FF) bf16 lane-dense
        h = jnp.maximum(
            jnp.dot(x.astype(bf), w1, preferred_element_type=f32) + b1_ref[l],
            0.0)
        ff = jax.lax.dot_general(h.astype(bf), w2t,
                                 (((1,), (1,)), ((), ())),
                                 preferred_element_type=f32) + lvec_ref[l, 3:4, :]
        x = _layernorm(x + ff, lvec_ref[l, 4:5, :], lvec_ref[l, 5:6, :])

    # ----- actor / critic heads (only row 0 of the slab is ever used) -----------
    h1 = jnp.maximum(
        jnp.dot(x.astype(bf), hw1_ref[...], preferred_element_type=f32)
        + hbias_ref[0:1, :],
        0.0)                                                      # (SUB, 512) f32

    # actor: de-padded (256,128) bf16 fc2; padded columns carry bias -1e30
    logits = jnp.dot(h1[:, 0:HEAD_HID].astype(bf), aw2p_ref[...],
                     preferred_element_type=f32) + hbias_ref[1:2, 0:PROB_LANES]
    m = jnp.max(logits, axis=-1, keepdims=True)
    e = jnp.exp(logits - m)
    probs = e / jnp.sum(e, axis=-1, keepdims=True)                # exact softmax

    # critic: VPU row-dot with the critic fc2 row (actor half of the row is zero)
    value = (jnp.sum(h1 * hbias_ref[2:3, :], axis=-1, keepdims=True)
             + hbias_ref[3:4, 0:1])                               # (SUB, 1)

    out_ref[:, 0:PROB_LANES] = probs[0:1, :]
    out_ref[:, PROB_LANES:2 * PROB_LANES] = jnp.broadcast_to(value[0:1, :],
                                                             (1, PROB_LANES))


def transformer_actor_critic_forward(state, p, action_dim):
    """state: (N, E) f32.  Returns (action_probs (1, A), state_value (1, 1))."""
    N, E = state.shape
    L = p["wattn"].shape[0]
    FF = p["b1"].shape[2]
    SUB = 8 if N >= 8 else N   # only the first sublane tile ever affects the output

    z2 = lambda i: (0, 0)
    z3 = lambda i: (0, 0, 0)

    in_specs = [
        pl.BlockSpec((SUB, E), z2),                        # state (first tile only)
        pl.BlockSpec((L, E, E), z3),                       # fused attention weight
        pl.BlockSpec((L, 8, E), z3),                       # packed per-layer vectors
        pl.BlockSpec((L, 2 * E, FF), z3),                  # [w1 ; w2t] slab
        pl.BlockSpec((L, 1, FF), z3),                      # b1
        pl.BlockSpec((E, 2 * HEAD_HID), z2),               # fused head fc1 weight (bf16)
        pl.BlockSpec((4, 2 * HEAD_HID), z2),               # packed head vectors (f32)
        pl.BlockSpec((HEAD_HID, PROB_LANES), z2),          # de-padded actor fc2 (bf16)
    ]
    out_specs = pl.BlockSpec((1, 2 * PROB_LANES), z2)

    out_slab = pl.pallas_call(
        _tac_kernel,
        out_shape=jax.ShapeDtypeStruct((1, 2 * PROB_LANES), jnp.float32),
        grid_spec=pltpu.PrefetchScalarGridSpec(
            num_scalar_prefetch=0,
            grid=(1,),                       # single step: layer loop lives in-kernel
            in_specs=in_specs,
            out_specs=out_specs),
        compiler_params=pltpu.CompilerParams(
            dimension_semantics=("arbitrary",),
            vmem_limit_bytes=8 * 1024 * 1024),
        # TODO(synk): if the caller ever evaluates many independent states, add a
        # leading "parallel" grid axis over 8-row tiles so v7x's second TensorCore
        # shares the work and the weight stream is amortized across states.
    )(state, p["wattn"], p["lvec"], p["wff"], p["b1"],
      p["hw1"], p["hbias"], p["aw2p"])

    return out_slab[:, :action_dim], out_slab[:, PROB_LANES:PROB_LANES + 1]


def init_params(key, action_dim, embedding_dim, num_encoder_layers, ff_dim=2048):
    """Deterministic synthetic parameters matching the PyTorch module's shapes,
    pre-packed for the kernel.  Matmul weights are bf16; biases / LayerNorm stay f32."""
    assert action_dim <= PROB_LANES
    E, FF, L, A = embedding_dim, ff_dim, num_encoder_layers, action_dim
    bf = jnp.bfloat16

    def dense(k, fan_in, shape):
        return jax.random.normal(k, shape, jnp.float32) / jnp.sqrt(float(fan_in))

    keys = iter(jax.random.split(key, 8 * L + 10))

    wattn_l, lvec_l, wff_l, b1_l = [], [], [], []
    for _ in range(L):
        wv = dense(next(keys), E, (E, E))
        bv = dense(next(keys), E, (1, E))
        wo = dense(next(keys), E, (E, E))
        bo = dense(next(keys), E, (1, E))
        w1 = dense(next(keys), E, (E, FF))
        b1 = dense(next(keys), E, (1, FF))
        w2t = dense(next(keys), FF, (E, FF))        # Linear(FF->E) weight, lane-dense (out,in)
        b2 = dense(next(keys), FF, (1, E))
        g1 = jnp.ones((1, E), jnp.float32); be1 = jnp.zeros((1, E), jnp.float32)
        g2 = jnp.ones((1, E), jnp.float32); be2 = jnp.zeros((1, E), jnp.float32)

        # offline fusion of the degenerate (seq-len-1) attention, in f32
        wattn = wv @ wo
        battn = bv @ wo + bo

        wattn_l.append(wattn.astype(bf))
        lvec_l.append(jnp.concatenate(
            [battn, g1, be1, b2, g2, be2, jnp.zeros((2, E), jnp.float32)], axis=0))
        wff_l.append(jnp.concatenate([w1, w2t], axis=0).astype(bf))   # (2E, FF)
        b1_l.append(b1)

    # heads
    aw1 = dense(next(keys), E, (E, HEAD_HID))
    ab1 = dense(next(keys), E, (1, HEAD_HID))
    aw2 = dense(next(keys), HEAD_HID, (HEAD_HID, A))
    ab2 = dense(next(keys), HEAD_HID, (1, A))
    cw1 = dense(next(keys), E, (E, HEAD_HID))
    cb1 = dense(next(keys), E, (1, HEAD_HID))
    cw2 = dense(next(keys), HEAD_HID, (HEAD_HID, 1))
    cb2 = dense(next(keys), HEAD_HID, (1, 1))

    hw1 = jnp.concatenate([aw1, cw1], axis=1).astype(bf)              # (E, 512) bf16
    aw2p = jnp.zeros((HEAD_HID, PROB_LANES), jnp.float32)
    aw2p = aw2p.at[:, :A].set(aw2).astype(bf)                         # (256, 128) bf16

    hbias = jnp.zeros((4, 2 * HEAD_HID), jnp.float32)
    hbias = hbias.at[0, :].set(jnp.concatenate([ab1, cb1], axis=1)[0])    # fc1 bias
    hbias = hbias.at[1, :PROB_LANES].set(-1e30)                           # padded logits
    hbias = hbias.at[1, :A].set(ab2[0])                                   # actor fc2 bias
    hbias = hbias.at[2, HEAD_HID:].set(cw2[:, 0])                         # critic fc2 row
    hbias = hbias.at[3, 0].set(cb2[0, 0])                                 # critic fc2 bias

    return {
        "wattn": jnp.stack(wattn_l),       # (L, E, E)   bf16
        "lvec": jnp.stack(lvec_l),         # (L, 8, E)   f32
        "wff": jnp.stack(wff_l),           # (L, 2E, FF) bf16
        "b1": jnp.stack(b1_l),             # (L, 1, FF)  f32
        "hw1": hw1, "hbias": hbias, "aw2p": aw2p,
    }


def reference_forward(state, p, action_dim):
    """Pure-JAX reference mirroring the kernel's fusion and precision choices
    (mathematically identical to the PyTorch module's seq-len-1 forward)."""
    bf, f32 = jnp.bfloat16, jnp.float32
    E = state.shape[1]
    L = p["wattn"].shape[0]
    x = state
    for l in range(L):
        lv = p["lvec"][l]
        sa = jnp.dot(x.astype(bf), p["wattn"][l], preferred_element_type=f32) + lv[0:1]
        x = _layernorm(x + sa, lv[1:2], lv[2:3])
        w1 = p["wff"][l, :E]
        w2t = p["wff"][l, E:]
        h = jnp.maximum(
            jnp.dot(x.astype(bf), w1, preferred_element_type=f32) + p["b1"][l], 0.0)
        ff = jax.lax.dot_general(h.astype(bf), w2t, (((1,), (1,)), ((), ())),
                                 preferred_element_type=f32) + lv[3:4]
        x = _layernorm(x + ff, lv[4:5], lv[5:6])
    tok0 = x[0:1, :]
    h1 = jnp.maximum(
        jnp.dot(tok0.astype(bf), p["hw1"], preferred_element_type=f32) + p["hbias"][0:1],
        0.0)
    logits = jnp.dot(h1[:, :HEAD_HID].astype(bf), p["aw2p"],
                     preferred_element_type=f32) + p["hbias"][1:2, :PROB_LANES]
    probs = jax.nn.softmax(logits, axis=-1)
    value = jnp.sum(h1 * p["hbias"][2:3], axis=-1, keepdims=True) + p["hbias"][3:4, 0:1]
    return probs[:, :action_dim], value


if __name__ == "__main__":
    # Small, deterministic configuration consistent with the module's forward.
    state_dim = 32           # unused by the PyTorch forward (kept for signature fidelity)
    action_dim = 6
    embedding_dim = 32
    num_heads = 4            # does not affect the output for seq-len-1 attention
    num_encoder_layers = 2
    ff_dim = 2048            # nn.TransformerEncoderLayer default dim_feedforward
    num_tokens = 8           # `state` has shape (num_tokens, embedding_dim)

    root = jax.random.PRNGKey(0)
    k_param, k_state = jax.random.split(root)
    params = init_params(k_param, action_dim, embedding_dim, num_encoder_layers, ff_dim)
    state = jax.random.normal(k_state, (num_tokens, embedding_dim), jnp.float32)

    probs, value = transformer_actor_critic_forward(state, params, action_dim)
    probs, value = jax.block_until_ready((probs, value))

    ref_probs, ref_value = reference_forward(state, params, action_dim)
    np.testing.assert_allclose(np.asarray(probs), np.asarray(ref_probs), rtol=2e-2, atol=2e-3)
    np.testing.assert_allclose(np.asarray(value), np.asarray(ref_value), rtol=2e-2, atol=2e-2)
    assert probs.shape == (1, action_dim) and value.shape == (1, 1)
    assert abs(float(jnp.sum(probs)) - 1.0) < 1e-4   # exact-division softmax

    print("KERNEL_OK")
</pallas_src>

<mosaic_0001>
module attributes {stable_mosaic.version = 11 : i64} {
  func.func @_tac_kernel(%arg0: i32, %arg1: memref<8x32xf32, #tpu.memory_space<vmem>>, %arg2: memref<2x32x32xbf16, #tpu.memory_space<vmem>>, %arg3: memref<2x8x32xf32, #tpu.memory_space<vmem>>, %arg4: memref<2x64x2048xbf16, #tpu.memory_space<vmem>>, %arg5: memref<2x1x2048xf32, #tpu.memory_space<vmem>>, %arg6: memref<32x512xbf16, #tpu.memory_space<vmem>>, %arg7: memref<4x512xf32, #tpu.memory_space<vmem>>, %arg8: memref<256x128xbf16, #tpu.memory_space<vmem>>, %arg9: memref<1x256xf32, #tpu.memory_space<vmem>>) attributes {dimension_semantics = [#tpu.dimension_semantics<arbitrary>], iteration_bounds = array<i64: 1>, scalar_prefetch = 0 : i64, scratch_operands = 0 : i64, tpu.core_type = #tpu.core_type<tc>, window_params = [{pipeline_mode = #tpu.pipeline_mode<synchronous>, transform_indices = @transform_0, window_bounds = array<i64: 8, 32>}, {pipeline_mode = #tpu.pipeline_mode<synchronous>, transform_indices = @transform_1, window_bounds = array<i64: 2, 32, 32>}, {pipeline_mode = #tpu.pipeline_mode<synchronous>, transform_indices = @transform_2, window_bounds = array<i64: 2, 8, 32>}, {pipeline_mode = #tpu.pipeline_mode<synchronous>, transform_indices = @transform_3, window_bounds = array<i64: 2, 64, 2048>}, {pipeline_mode = #tpu.pipeline_mode<synchronous>, transform_indices = @transform_4, window_bounds = array<i64: 2, 1, 2048>}, {pipeline_mode = #tpu.pipeline_mode<synchronous>, transform_indices = @transform_5, window_bounds = array<i64: 32, 512>}, {pipeline_mode = #tpu.pipeline_mode<synchronous>, transform_indices = @transform_6, window_bounds = array<i64: 4, 512>}, {pipeline_mode = #tpu.pipeline_mode<synchronous>, transform_indices = @transform_7, window_bounds = array<i64: 256, 128>}, {pipeline_mode = #tpu.pipeline_mode<synchronous>, transform_indices = @transform_8, window_bounds = array<i64: 1, 256>}]} {
    %c0 = arith.constant 0 : index
    %c0_0 = arith.constant 0 : index
    %0 = vector.load %arg1[%c0, %c0_0] : memref<8x32xf32, #tpu.memory_space<vmem>>, vector<8x32xf32>
    %1 = arith.truncf %0 : vector<8x32xf32> to vector<8x32xbf16>
    %c0_1 = arith.constant 0 : index
    %c0_2 = arith.constant 0 : index
    %c0_3 = arith.constant 0 : index
    %2 = vector.load %arg2[%c0_1, %c0_2, %c0_3] : memref<2x32x32xbf16, #tpu.memory_space<vmem>>, vector<1x32x32xbf16>
    %3 = vector.shape_cast %2 : vector<1x32x32xbf16> to vector<32x32xbf16>
    %cst = arith.constant dense<0.000000e+00> : vector<8x32xf32>
    %4 = tpu.matmul %1, %3, %cst {dimension_numbers = #tpu.dot_dimension_numbers<[1], [0], [0], [1], [0, 0, 1, 1], [], []>} : vector<8x32xbf16>, vector<32x32xbf16>, vector<8x32xf32> -> vector<8x32xf32>
    %c0_4 = arith.constant 0 : index
    %c0_5 = arith.constant 0 : index
    %c0_6 = arith.constant 0 : index
    %5 = vector.load %arg3[%c0_4, %c0_5, %c0_6] : memref<2x8x32xf32, #tpu.memory_space<vmem>>, vector<1x1x32xf32>
    %6 = vector.shape_cast %5 : vector<1x1x32xf32> to vector<1x32xf32>
    %7 = vector.broadcast %6 : vector<1x32xf32> to vector<8x32xf32>
    %8 = arith.addf %4, %7 : vector<8x32xf32>
    %9 = arith.addf %0, %8 : vector<8x32xf32>
    %c0_7 = arith.constant 0 : index
    %c1 = arith.constant 1 : index
    %c0_8 = arith.constant 0 : index
    %10 = vector.load %arg3[%c0_7, %c1, %c0_8] : memref<2x8x32xf32, #tpu.memory_space<vmem>>, vector<1x1x32xf32>
    %11 = vector.shape_cast %10 : vector<1x1x32xf32> to vector<1x32xf32>
    %c0_9 = arith.constant 0 : index
    %c2 = arith.constant 2 : index
    %c0_10 = arith.constant 0 : index
    %12 = vector.load %arg3[%c0_9, %c2, %c0_10] : memref<2x8x32xf32, #tpu.memory_space<vmem>>, vector<1x1x32xf32>
    %13 = vector.shape_cast %12 : vector<1x1x32xf32> to vector<1x32xf32>
    %cst_11 = arith.constant dense<0.000000e+00> : vector<8xf32>
    %14 = vector.multi_reduction <add>, %9, %cst_11 [1] : vector<8x32xf32> to vector<8xf32>
    %15 = vector.shape_cast %14 : vector<8xf32> to vector<8x1xf32>
    %cst_12 = arith.constant 3.200000e+01 : f32
    %16 = vector.broadcast %cst_12 : f32 to vector<8x1xf32>
    %17 = arith.divf %15, %16 : vector<8x1xf32>
    %18 = vector.broadcast %17 : vector<8x1xf32> to vector<8x32xf32>
    %19 = arith.subf %9, %18 : vector<8x32xf32>
    %20 = arith.mulf %19, %19 : vector<8x32xf32>
    %cst_13 = arith.constant dense<0.000000e+00> : vector<8xf32>
    %21 = vector.multi_reduction <add>, %20, %cst_13 [1] : vector<8x32xf32> to vector<8xf32>
    %22 = vector.shape_cast %21 : vector<8xf32> to vector<8x1xf32>
    %cst_14 = arith.constant 3.200000e+01 : f32
    %23 = vector.broadcast %cst_14 : f32 to vector<8x1xf32>
    %24 = arith.divf %22, %23 : vector<8x1xf32>
    %25 = vector.broadcast %17 : vector<8x1xf32> to vector<8x32xf32>
    %26 = arith.subf %9, %25 : vector<8x32xf32>
    %cst_15 = arith.constant 9.99999974E-6 : f32
    %27 = vector.broadcast %cst_15 : f32 to vector<8x1xf32>
    %28 = arith.addf %24, %27 : vector<8x1xf32>
    %29 = math.rsqrt %28 : vector<8x1xf32>
    %30 = vector.broadcast %29 : vector<8x1xf32> to vector<8x32xf32>
    %31 = arith.mulf %26, %30 : vector<8x32xf32>
    %32 = vector.broadcast %11 : vector<1x32xf32> to vector<8x32xf32>
    %33 = arith.mulf %31, %32 : vector<8x32xf32>
    %34 = vector.broadcast %13 : vector<1x32xf32> to vector<8x32xf32>
    %35 = arith.addf %33, %34 : vector<8x32xf32>
    %c0_16 = arith.constant 0 : index
    %c0_17 = arith.constant 0 : index
    %c0_18 = arith.constant 0 : index
    %36 = vector.load %arg4[%c0_16, %c0_17, %c0_18] : memref<2x64x2048xbf16, #tpu.memory_space<vmem>>, vector<1x32x2048xbf16>
    %37 = vector.shape_cast %36 : vector<1x32x2048xbf16> to vector<32x2048xbf16>
    %c0_19 = arith.constant 0 : index
    %c32 = arith.constant 32 : index
    %c0_20 = arith.constant 0 : index
    %38 = vector.load %arg4[%c0_19, %c32, %c0_20] : memref<2x64x2048xbf16, #tpu.memory_space<vmem>>, vector<1x32x2048xbf16>
    %39 = vector.shape_cast %38 : vector<1x32x2048xbf16> to vector<32x2048xbf16>
    %40 = arith.truncf %35 : vector<8x32xf32> to vector<8x32xbf16>
    %cst_21 = arith.constant dense<0.000000e+00> : vector<8x2048xf32>
    %41 = tpu.matmul %40, %37, %cst_21 {dimension_numbers = #tpu.dot_dimension_numbers<[1], [0], [0], [1], [0, 0, 1, 1], [], []>} : vector<8x32xbf16>, vector<32x2048xbf16>, vector<8x2048xf32> -> vector<8x2048xf32>
    %c0_22 = arith.constant 0 : index
    %c0_23 = arith.constant 0 : index
    %c0_24 = arith.constant 0 : index
    %42 = vector.load %arg5[%c0_22, %c0_23, %c0_24] : memref<2x1x2048xf32, #tpu.memory_space<vmem>>, vector<1x1x2048xf32>
    %43 = vector.shape_cast %42 : vector<1x1x2048xf32> to vector<1x2048xf32>
    %44 = vector.broadcast %43 : vector<1x2048xf32> to vector<8x2048xf32>
    %45 = arith.addf %41, %44 : vector<8x2048xf32>
    %cst_25 = arith.constant 0.000000e+00 : f32
    %46 = vector.broadcast %cst_25 : f32 to vector<8x2048xf32>
    %47 = arith.maximumf %45, %46 : vector<8x2048xf32>
    %48 = arith.truncf %47 : vector<8x2048xf32> to vector<8x2048xbf16>
    %cst_26 = arith.constant dense<0.000000e+00> : vector<8x32xf32>
    %49 = tpu.matmul %48, %39, %cst_26 {dimension_numbers = #tpu.dot_dimension_numbers<[1], [1], [0], [0], [0, 0, 1, 0], [], []>} : vector<8x2048xbf16>, vector<32x2048xbf16>, vector<8x32xf32> -> vector<8x32xf32>
    %c0_27 = arith.constant 0 : index
    %c3 = arith.constant 3 : index
    %c0_28 = arith.constant 0 : index
    %50 = vector.load %arg3[%c0_27, %c3, %c0_28] : memref<2x8x32xf32, #tpu.memory_space<vmem>>, vector<1x1x32xf32>
    %51 = vector.shape_cast %50 : vector<1x1x32xf32> to vector<1x32xf32>
    %52 = vector.broadcast %51 : vector<1x32xf32> to vector<8x32xf32>
    %53 = arith.addf %49, %52 : vector<8x32xf32>
    %54 = arith.addf %35, %53 : vector<8x32xf32>
    %c0_29 = arith.constant 0 : index
    %c4 = arith.constant 4 : index
    %c0_30 = arith.constant 0 : index
    %55 = vector.load %arg3[%c0_29, %c4, %c0_30] : memref<2x8x32xf32, #tpu.memory_space<vmem>>, vector<1x1x32xf32>
    %56 = vector.shape_cast %55 : vector<1x1x32xf32> to vector<1x32xf32>
    %c0_31 = arith.constant 0 : index
    %c5 = arith.constant 5 : index
    %c0_32 = arith.constant 0 : index
    %57 = vector.load %arg3[%c0_31, %c5, %c0_32] : memref<2x8x32xf32, #tpu.memory_space<vmem>>, vector<1x1x32xf32>
    %58 = vector.shape_cast %57 : vector<1x1x32xf32> to vector<1x32xf32>
    %cst_33 = arith.constant dense<0.000000e+00> : vector<8xf32>
    %59 = vector.multi_reduction <add>, %54, %cst_33 [1] : vector<8x32xf32> to vector<8xf32>
    %60 = vector.shape_cast %59 : vector<8xf32> to vector<8x1xf32>
    %cst_34 = arith.constant 3.200000e+01 : f32
    %61 = vector.broadcast %cst_34 : f32 to vector<8x1xf32>
    %62 = arith.divf %60, %61 : vector<8x1xf32>
    %63 = vector.broadcast %62 : vector<8x1xf32> to vector<8x32xf32>
    %64 = arith.subf %54, %63 : vector<8x32xf32>
    %65 = arith.mulf %64, %64 : vector<8x32xf32>
    %cst_35 = arith.constant dense<0.000000e+00> : vector<8xf32>
    %66 = vector.multi_reduction <add>, %65, %cst_35 [1] : vector<8x32xf32> to vector<8xf32>
    %67 = vector.shape_cast %66 : vector<8xf32> to vector<8x1xf32>
    %cst_36 = arith.constant 3.200000e+01 : f32
    %68 = vector.broadcast %cst_36 : f32 to vector<8x1xf32>
    %69 = arith.divf %67, %68 : vector<8x1xf32>
    %70 = vector.broadcast %62 : vector<8x1xf32> to vector<8x32xf32>
    %71 = arith.subf %54, %70 : vector<8x32xf32>
    %cst_37 = arith.constant 9.99999974E-6 : f32
    %72 = vector.broadcast %cst_37 : f32 to vector<8x1xf32>
    %73 = arith.addf %69, %72 : vector<8x1xf32>
    %74 = math.rsqrt %73 : vector<8x1xf32>
    %75 = vector.broadcast %74 : vector<8x1xf32> to vector<8x32xf32>
    %76 = arith.mulf %71, %75 : vector<8x32xf32>
    %77 = vector.broadcast %56 : vector<1x32xf32> to vector<8x32xf32>
    %78 = arith.mulf %76, %77 : vector<8x32xf32>
    %79 = vector.broadcast %58 : vector<1x32xf32> to vector<8x32xf32>
    %80 = arith.addf %78, %79 : vector<8x32xf32>
    %81 = arith.truncf %80 : vector<8x32xf32> to vector<8x32xbf16>
    %c1_38 = arith.constant 1 : index
    %c0_39 = arith.constant 0 : index
    %c0_40 = arith.constant 0 : index
    %82 = vector.load %arg2[%c1_38, %c0_39, %c0_40] : memref<2x32x32xbf16, #tpu.memory_space<vmem>>, vector<1x32x32xbf16>
    %83 = vector.shape_cast %82 : vector<1x32x32xbf16> to vector<32x32xbf16>
    %cst_41 = arith.constant dense<0.000000e+00> : vector<8x32xf32>
    %84 = tpu.matmul %81, %83, %cst_41 {dimension_numbers = #tpu.dot_dimension_numbers<[1], [0], [0], [1], [0, 0, 1, 1], [], []>} : vector<8x32xbf16>, vector<32x32xbf16>, vector<8x32xf32> -> vector<8x32xf32>
    %c1_42 = arith.constant 1 : index
    %c0_43 = arith.constant 0 : index
    %c0_44 = arith.constant 0 : index
    %85 = vector.load %arg3[%c1_42, %c0_43, %c0_44] : memref<2x8x32xf32, #tpu.memory_space<vmem>>, vector<1x1x32xf32>
    %86 = vector.shape_cast %85 : vector<1x1x32xf32> to vector<1x32xf32>
    %87 = vector.broadcast %86 : vector<1x32xf32> to vector<8x32xf32>
    %88 = arith.addf %84, %87 : vector<8x32xf32>
    %89 = arith.addf %80, %88 : vector<8x32xf32>
    %c1_45 = arith.constant 1 : index
    %c1_46 = arith.constant 1 : index
    %c0_47 = arith.constant 0 : index
    %90 = vector.load %arg3[%c1_45, %c1_46, %c0_47] : memref<2x8x32xf32, #tpu.memory_space<vmem>>, vector<1x1x32xf32>
    %91 = vector.shape_cast %90 : vector<1x1x32xf32> to vector<1x32xf32>
    %c1_48 = arith.constant 1 : index
    %c2_49 = arith.constant 2 : index
    %c0_50 = arith.constant 0 : index
    %92 = vector.load %arg3[%c1_48, %c2_49, %c0_50] : memref<2x8x32xf32, #tpu.memory_space<vmem>>, vector<1x1x32xf32>
    %93 = vector.shape_cast %92 : vector<1x1x32xf32> to vector<1x32xf32>
    %cst_51 = arith.constant dense<0.000000e+00> : vector<8xf32>
    %94 = vector.multi_reduction <add>, %89, %cst_51 [1] : vector<8x32xf32> to vector<8xf32>
    %95 = vector.shape_cast %94 : vector<8xf32> to vector<8x1xf32>
    %cst_52 = arith.constant 3.200000e+01 : f32
    %96 = vector.broadcast %cst_52 : f32 to vector<8x1xf32>
    %97 = arith.divf %95, %96 : vector<8x1xf32>
    %98 = vector.broadcast %97 : vector<8x1xf32> to vector<8x32xf32>
    %99 = arith.subf %89, %98 : vector<8x32xf32>
    %100 = arith.mulf %99, %99 : vector<8x32xf32>
    %cst_53 = arith.constant dense<0.000000e+00> : vector<8xf32>
    %101 = vector.multi_reduction <add>, %100, %cst_53 [1] : vector<8x32xf32> to vector<8xf32>
    %102 = vector.shape_cast %101 : vector<8xf32> to vector<8x1xf32>
    %cst_54 = arith.constant 3.200000e+01 : f32
    %103 = vector.broadcast %cst_54 : f32 to vector<8x1xf32>
    %104 = arith.divf %102, %103 : vector<8x1xf32>
    %105 = vector.broadcast %97 : vector<8x1xf32> to vector<8x32xf32>
    %106 = arith.subf %89, %105 : vector<8x32xf32>
    %cst_55 = arith.constant 9.99999974E-6 : f32
    %107 = vector.broadcast %cst_55 : f32 to vector<8x1xf32>
    %108 = arith.addf %104, %107 : vector<8x1xf32>
    %109 = math.rsqrt %108 : vector<8x1xf32>
    %110 = vector.broadcast %109 : vector<8x1xf32> to vector<8x32xf32>
    %111 = arith.mulf %106, %110 : vector<8x32xf32>
    %112 = vector.broadcast %91 : vector<1x32xf32> to vector<8x32xf32>
    %113 = arith.mulf %111, %112 : vector<8x32xf32>
    %114 = vector.broadcast %93 : vector<1x32xf32> to vector<8x32xf32>
    %115 = arith.addf %113, %114 : vector<8x32xf32>
    %c1_56 = arith.constant 1 : index
    %c0_57 = arith.constant 0 : index
    %c0_58 = arith.constant 0 : index
    %116 = vector.load %arg4[%c1_56, %c0_57, %c0_58] : memref<2x64x2048xbf16, #tpu.memory_space<vmem>>, vector<1x32x2048xbf16>
    %117 = vector.shape_cast %116 : vector<1x32x2048xbf16> to vector<32x2048xbf16>
    %c1_59 = arith.constant 1 : index
    %c32_60 = arith.constant 32 : index
    %c0_61 = arith.constant 0 : index
    %118 = vector.load %arg4[%c1_59, %c32_60, %c0_61] : memref<2x64x2048xbf16, #tpu.memory_space<vmem>>, vector<1x32x2048xbf16>
    %119 = vector.shape_cast %118 : vector<1x32x2048xbf16> to vector<32x2048xbf16>
    %120 = arith.truncf %115 : vector<8x32xf32> to vector<8x32xbf16>
    %cst_62 = arith.constant dense<0.000000e+00> : vector<8x2048xf32>
    %121 = tpu.matmul %120, %117, %cst_62 {dimension_numbers = #tpu.dot_dimension_numbers<[1], [0], [0], [1], [0, 0, 1, 1], [], []>} : vector<8x32xbf16>, vector<32x2048xbf16>, vector<8x2048xf32> -> vector<8x2048xf32>
    %c1_63 = arith.constant 1 : index
    %c0_64 = arith.constant 0 : index
    %c0_65 = arith.constant 0 : index
    %122 = vector.load %arg5[%c1_63, %c0_64, %c0_65] : memref<2x1x2048xf32, #tpu.memory_space<vmem>>, vector<1x1x2048xf32>
    %123 = vector.shape_cast %122 : vector<1x1x2048xf32> to vector<1x2048xf32>
    %124 = vector.broadcast %123 : vector<1x2048xf32> to vector<8x2048xf32>
    %125 = arith.addf %121, %124 : vector<8x2048xf32>
    %cst_66 = arith.constant 0.000000e+00 : f32
    %126 = vector.broadcast %cst_66 : f32 to vector<8x2048xf32>
    %127 = arith.maximumf %125, %126 : vector<8x2048xf32>
    %128 = arith.truncf %127 : vector<8x2048xf32> to vector<8x2048xbf16>
    %cst_67 = arith.constant dense<0.000000e+00> : vector<8x32xf32>
    %129 = tpu.matmul %128, %119, %cst_67 {dimension_numbers = #tpu.dot_dimension_numbers<[1], [1], [0], [0], [0, 0, 1, 0], [], []>} : vector<8x2048xbf16>, vector<32x2048xbf16>, vector<8x32xf32> -> vector<8x32xf32>
    %c1_68 = arith.constant 1 : index
    %c3_69 = arith.constant 3 : index
    %c0_70 = arith.constant 0 : index
    %130 = vector.load %arg3[%c1_68, %c3_69, %c0_70] : memref<2x8x32xf32, #tpu.memory_space<vmem>>, vector<1x1x32xf32>
    %131 = vector.shape_cast %130 : vector<1x1x32xf32> to vector<1x32xf32>
    %132 = vector.broadcast %131 : vector<1x32xf32> to vector<8x32xf32>
    %133 = arith.addf %129, %132 : vector<8x32xf32>
    %134 = arith.addf %115, %133 : vector<8x32xf32>
    %c1_71 = arith.constant 1 : index
    %c4_72 = arith.constant 4 : index
    %c0_73 = arith.constant 0 : index
    %135 = vector.load %arg3[%c1_71, %c4_72, %c0_73] : memref<2x8x32xf32, #tpu.memory_space<vmem>>, vector<1x1x32xf32>
    %136 = vector.shape_cast %135 : vector<1x1x32xf32> to vector<1x32xf32>
    %c1_74 = arith.constant 1 : index
    %c5_75 = arith.constant 5 : index
    %c0_76 = arith.constant 0 : index
    %137 = vector.load %arg3[%c1_74, %c5_75, %c0_76] : memref<2x8x32xf32, #tpu.memory_space<vmem>>, vector<1x1x32xf32>
    %138 = vector.shape_cast %137 : vector<1x1x32xf32> to vector<1x32xf32>
    %cst_77 = arith.constant dense<0.000000e+00> : vector<8xf32>
    %139 = vector.multi_reduction <add>, %134, %cst_77 [1] : vector<8x32xf32> to vector<8xf32>
    %140 = vector.shape_cast %139 : vector<8xf32> to vector<8x1xf32>
    %cst_78 = arith.constant 3.200000e+01 : f32
    %141 = vector.broadcast %cst_78 : f32 to vector<8x1xf32>
    %142 = arith.divf %140, %141 : vector<8x1xf32>
    %143 = vector.broadcast %142 : vector<8x1xf32> to vector<8x32xf32>
    %144 = arith.subf %134, %143 : vector<8x32xf32>
    %145 = arith.mulf %144, %144 : vector<8x32xf32>
    %cst_79 = arith.constant dense<0.000000e+00> : vector<8xf32>
    %146 = vector.multi_reduction <add>, %145, %cst_79 [1] : vector<8x32xf32> to vector<8xf32>
    %147 = vector.shape_cast %146 : vector<8xf32> to vector<8x1xf32>
    %cst_80 = arith.constant 3.200000e+01 : f32
    %148 = vector.broadcast %cst_80 : f32 to vector<8x1xf32>
    %149 = arith.divf %147, %148 : vector<8x1xf32>
    %150 = vector.broadcast %142 : vector<8x1xf32> to vector<8x32xf32>
    %151 = arith.subf %134, %150 : vector<8x32xf32>
    %cst_81 = arith.constant 9.99999974E-6 : f32
    %152 = vector.broadcast %cst_81 : f32 to vector<8x1xf32>
    %153 = arith.addf %149, %152 : vector<8x1xf32>
    %154 = math.rsqrt %153 : vector<8x1xf32>
    %155 = vector.broadcast %154 : vector<8x1xf32> to vector<8x32xf32>
    %156 = arith.mulf %151, %155 : vector<8x32xf32>
    %157 = vector.broadcast %136 : vector<1x32xf32> to vector<8x32xf32>
    %158 = arith.mulf %156, %157 : vector<8x32xf32>
    %159 = vector.broadcast %138 : vector<1x32xf32> to vector<8x32xf32>
    %160 = arith.addf %158, %159 : vector<8x32xf32>
    %161 = arith.truncf %160 : vector<8x32xf32> to vector<8x32xbf16>
    %c0_82 = arith.constant 0 : index
    %c0_83 = arith.constant 0 : index
    %162 = vector.load %arg6[%c0_82, %c0_83] : memref<32x512xbf16, #tpu.memory_space<vmem>>, vector<32x512xbf16>
    %cst_84 = arith.constant dense<0.000000e+00> : vector<8x512xf32>
    %163 = tpu.matmul %161, %162, %cst_84 {dimension_numbers = #tpu.dot_dimension_numbers<[1], [0], [0], [1], [0, 0, 1, 1], [], []>} : vector<8x32xbf16>, vector<32x512xbf16>, vector<8x512xf32> -> vector<8x512xf32>
    %c0_85 = arith.constant 0 : index
    %c0_86 = arith.constant 0 : index
    %164 = vector.load %arg7[%c0_85, %c0_86] : memref<4x512xf32, #tpu.memory_space<vmem>>, vector<1x512xf32>
    %165 = vector.broadcast %164 : vector<1x512xf32> to vector<8x512xf32>
    %166 = arith.addf %163, %165 : vector<8x512xf32>
    %cst_87 = arith.constant 0.000000e+00 : f32
    %167 = vector.broadcast %cst_87 : f32 to vector<8x512xf32>
    %168 = arith.maximumf %166, %167 : vector<8x512xf32>
    %169 = vector.extract_strided_slice %168 {offsets = [0, 0], sizes = [8, 256], strides = [1, 1]} : vector<8x512xf32> to vector<8x256xf32>
    %170 = arith.truncf %169 : vector<8x256xf32> to vector<8x256xbf16>
    %c0_88 = arith.constant 0 : index
    %c0_89 = arith.constant 0 : index
    %171 = vector.load %arg8[%c0_88, %c0_89] : memref<256x128xbf16, #tpu.memory_space<vmem>>, vector<256x128xbf16>
    %cst_90 = arith.constant dense<0.000000e+00> : vector<8x128xf32>
    %172 = tpu.matmul %170, %171, %cst_90 {dimension_numbers = #tpu.dot_dimension_numbers<[1], [0], [0], [1], [0, 0, 1, 1], [], []>} : vector<8x256xbf16>, vector<256x128xbf16>, vector<8x128xf32> -> vector<8x128xf32>
    %c1_91 = arith.constant 1 : index
    %c0_92 = arith.constant 0 : index
    %173 = vector.load %arg7[%c1_91, %c0_92] : memref<4x512xf32, #tpu.memory_space<vmem>>, vector<1x128xf32>
    %174 = vector.broadcast %173 : vector<1x128xf32> to vector<8x128xf32>
    %175 = arith.addf %172, %174 : vector<8x128xf32>
    %cst_93 = arith.constant dense<0xFF800000> : vector<8xf32>
    %176 = vector.multi_reduction <maximumf>, %175, %cst_93 [1] : vector<8x128xf32> to vector<8xf32>
    %177 = vector.shape_cast %176 : vector<8xf32> to vector<8x1xf32>
    %178 = vector.broadcast %177 : vector<8x1xf32> to vector<8x128xf32>
    %179 = arith.subf %175, %178 : vector<8x128xf32>
    %180 = math.exp %179 : vector<8x128xf32>
    %cst_94 = arith.constant dense<0.000000e+00> : vector<8xf32>
    %181 = vector.multi_reduction <add>, %180, %cst_94 [1] : vector<8x128xf32> to vector<8xf32>
    %182 = vector.shape_cast %181 : vector<8xf32> to vector<8x1xf32>
    %183 = vector.broadcast %182 : vector<8x1xf32> to vector<8x128xf32>
    %184 = arith.divf %180, %183 : vector<8x128xf32>
    %c2_95 = arith.constant 2 : index
    %c0_96 = arith.constant 0 : index
    %185 = vector.load %arg7[%c2_95, %c0_96] : memref<4x512xf32, #tpu.memory_space<vmem>>, vector<1x512xf32>
    %186 = vector.broadcast %185 : vector<1x512xf32> to vector<8x512xf32>
    %187 = arith.mulf %168, %186 : vector<8x512xf32>
    %cst_97 = arith.constant dense<0.000000e+00> : vector<8xf32>
    %188 = vector.multi_reduction <add>, %187, %cst_97 [1] : vector<8x512xf32> to vector<8xf32>
    %189 = vector.shape_cast %188 : vector<8xf32> to vector<8x1xf32>
    %c3_98 = arith.constant 3 : index
    %c0_99 = arith.constant 0 : index
    %190 = vector.load %arg7[%c3_98, %c0_99] : memref<4x512xf32, #tpu.memory_space<vmem>>, vector<1x1xf32>
    %191 = vector.broadcast %190 : vector<1x1xf32> to vector<8x1xf32>
    %192 = arith.addf %189, %191 : vector<8x1xf32>
    %193 = vector.extract_strided_slice %184 {offsets = [0, 0], sizes = [1, 128], strides = [1, 1]} : vector<8x128xf32> to vector<1x128xf32>
    %c0_100 = arith.constant 0 : index
    %c0_101 = arith.constant 0 : index
    %194 = vector.load %arg9[%c0_100, %c0_101] : memref<1x256xf32, #tpu.memory_space<vmem>>, vector<1x128xf32>
    tpu.vector_store %arg9[%c0_100, %c0_101], %193 {strides = array<i32>} : memref<1x256xf32, #tpu.memory_space<vmem>>, vector<1x128xf32>,
    %195 = vector.extract_strided_slice %192 {offsets = [0, 0], sizes = [1, 1], strides = [1, 1]} : vector<8x1xf32> to vector<1x1xf32>
    %196 = vector.shape_cast %195 : vector<1x1xf32> to vector<1x1xf32>
    %197 = vector.broadcast %196 : vector<1x1xf32> to vector<1x128xf32>
    %c0_102 = arith.constant 0 : index
    %c128 = arith.constant 128 : index
    %198 = vector.load %arg9[%c0_102, %c128] : memref<1x256xf32, #tpu.memory_space<vmem>>, vector<1x128xf32>
    tpu.vector_store %arg9[%c0_102, %c128], %197 {strides = array<i32>} : memref<1x256xf32, #tpu.memory_space<vmem>>, vector<1x128xf32>,
    return
  }
  func.func @transform_0(%arg0: i32) -> (i32, i32) {
    %c0_i32 = arith.constant 0 : i32
    %c0_i32_0 = arith.constant 0 : i32
    %c0_i32_1 = arith.constant 0 : i32
    return %c0_i32, %c0_i32_0 : i32, i32
  }
  func.func @transform_1(%arg0: i32) -> (i32, i32, i32) {
    %c0_i32 = arith.constant 0 : i32
    %c0_i32_0 = arith.constant 0 : i32
    %c0_i32_1 = arith.constant 0 : i32
    %c0_i32_2 = arith.constant 0 : i32
    return %c0_i32, %c0_i32_0, %c0_i32_1 : i32, i32, i32
  }
  func.func @transform_2(%arg0: i32) -> (i32, i32, i32) {
    %c0_i32 = arith.constant 0 : i32
    %c0_i32_0 = arith.constant 0 : i32
    %c0_i32_1 = arith.constant 0 : i32
    %c0_i32_2 = arith.constant 0 : i32
    return %c0_i32, %c0_i32_0, %c0_i32_1 : i32, i32, i32
  }
  func.func @transform_3(%arg0: i32) -> (i32, i32, i32) {
    %c0_i32 = arith.constant 0 : i32
    %c0_i32_0 = arith.constant 0 : i32
    %c0_i32_1 = arith.constant 0 : i32
    %c0_i32_2 = arith.constant 0 : i32
    return %c0_i32, %c0_i32_0, %c0_i32_1 : i32, i32, i32
  }
  func.func @transform_4(%arg0: i32) -> (i32, i32, i32) {
    %c0_i32 = arith.constant 0 : i32
    %c0_i32_0 = arith.constant 0 : i32
    %c0_i32_1 = arith.constant 0 : i32
    %c0_i32_2 = arith.constant 0 : i32
    return %c0_i32, %c0_i32_0, %c0_i32_1 : i32, i32, i32
  }
  func.func @transform_5(%arg0: i32) -> (i32, i32) {
    %c0_i32 = arith.constant 0 : i32
    %c0_i32_0 = arith.constant 0 : i32
    %c0_i32_1 = arith.constant 0 : i32
    return %c0_i32, %c0_i32_0 : i32, i32
  }
  func.func @transform_6(%arg0: i32) -> (i32, i32) {
    %c0_i32 = arith.constant 0 : i32
    %c0_i32_0 = arith.constant 0 : i32
    %c0_i32_1 = arith.constant 0 : i32
    return %c0_i32, %c0_i32_0 : i32, i32
  }
  func.func @transform_7(%arg0: i32) -> (i32, i32) {
    %c0_i32 = arith.constant 0 : i32
    %c0_i32_0 = arith.constant 0 : i32
    %c0_i32_1 = arith.constant 0 : i32
    return %c0_i32, %c0_i32_0 : i32, i32
  }
  func.func @transform_8(%arg0: i32) -> (i32, i32) {
    %c0_i32 = arith.constant 0 : i32
    %c0_i32_0 = arith.constant 0 : i32
    %c0_i32_1 = arith.constant 0 : i32
    return %c0_i32, %c0_i32_0 : i32, i32
  }
}

</mosaic_0001>

<bundles_post_ra>
// kernel: tpu_custom_call.1
= control target key start
LH: loop header
LB: loop body
LE: loop exit
PB: predicated region body
PF: predicated region fallthrough
CT: control target
= control target key end

     0   :  { %13 = vsyncpa [#allocation3], 0  ;;  %s3808_s0 = inlined_call_operand.hbm [shape: f32[8,32], index: 0, kind: input, shape index: {}]   ;;  %s3809_s1 = inlined_call_operand.hbm [shape: bf16[2,32,32], index: 1, kind: input, shape index: {}]   ;;  %s3810_s2 = inlined_call_operand.hbm [shape: f32[2,8,32], index: 2, kind: input, shape index: {}]   ;;  %s3811_s3 = inlined_call_operand.hbm [shape: bf16[2,64,2048], index: 3, kind: input, shape index: {}]   ;;  %s3812_s4 = inlined_call_operand.hbm [shape: f32[2,1,2048], index: 4, kind: input, shape index: {}]   ;;  %s3813_s5 = inlined_call_operand.hbm [shape: bf16[32,512], index: 5, kind: input, shape index: {}]   ;;  %s3814_s6 = inlined_call_operand.hbm [shape: f32[4,512], index: 6, kind: input, shape index: {}]   ;;  %s3815_s7 = inlined_call_operand.hbm [shape: bf16[256,128], index: 7, kind: input, shape index: {}]   ;;  %s3816_s8 = inlined_call_operand.hbm [shape: f32[1,256], index: 8, kind: output, shape index: {}]  }
   0x1   :  { %14 = vsyncpa [#allocation6], 0 }
   0x2   :  { %15 = vsyncpa [#allocation9], 0 }
   0x3   :  { %16 = vsyncpa [#allocation12], 0 }
   0x4   :  { %17 = vsyncpa [#allocation15], 0  ;;  %s34_s29 = sshll.u32 %s3809_s1, 4  ;;  %s35_s29 = int_to_ptr.hbm [resolvable:$true] %s34_s29 }
   0x5   :  { %18 = vsyncpa [#allocation4], 0  ;;  %s3546_s30 = smov [#allocation5]   ;;  %s60_s12 = sshll.u32 %s3811_s3, 4  ;;  %s61_s12 = int_to_ptr.hbm [resolvable:$true] %s60_s12 }
   0x6   :  { %s36_s9 = sshll.u32 %s3546_s30, 4  ;;  %s3547_s13 = smov 64   ;;  %s37_s9 = int_to_ptr.vmem [resolvable:$true] %s36_s9 }
   0x7   :  { %s3548_s14 = smov 4   ;;  %s3549_s15 = smov [#allocation8]  }
   0x8   :  { %42 = dma.hbm_to_vmem [thread:$0]  %s35_s29, 512, %s37_s9, [#allocation6], %s3547_s13, %s3547_s13, %s3548_s14  }
   0x9   :  { %s62_s16 = sshll.u32 %s3549_s15, 4  ;;  %s3550_s1 = smov 1024   ;;  %s63_s16 = int_to_ptr.vmem [resolvable:$true] %s62_s16 }
   0xa   :  { %68 = dma.hbm_to_vmem [thread:$0]  %s61_s12, 16384, %s63_s16, [#allocation9], %s3550_s1, %s3550_s1, %s3547_s13  }
   0xb   :  { %s86_s19 = sshll.u32 %s3813_s5, 4  ;;  %s3551_s20 = smov [#allocation11]   ;;  %s87_s19 = int_to_ptr.hbm [resolvable:$true] %s86_s19 }
   0xc   :  { %s88_s3 = sshll.u32 %s3551_s20, 4  ;;  %s24_s23 = sshll.u32 %s3808_s0, 4  ;;  %s89_s3 = int_to_ptr.vmem [resolvable:$true] %s88_s3  ;;  %s25_s23 = int_to_ptr.hbm [resolvable:$true] %s24_s23 }
   0xd   :  { %s3552_s24 = smov 256   ;;  %s3553_s25 = smov 16  }
   0xe   :  { %94 = dma.hbm_to_vmem [thread:$0]  %s87_s19, 1024, %s89_s3, [#allocation12], %s3552_s24, %s3552_s24, %s3553_s25  }
   0xf   :  { %s47_s28 = sshll.u32 %s3810_s2, 4  ;;  %s3554_s29 = smov [#allocation2]   ;;  %s48_s28 = int_to_ptr.hbm [resolvable:$true] %s47_s28 }
  0x10   :  { %s26_s30 = sshll.u32 %s3554_s29, 4  ;;  %s3555_s5 = smov [#allocation7]   ;;  %s27_s30 = int_to_ptr.vmem [resolvable:$true] %s26_s30 }
  0x11   :  { %29 = dma.hbm_to_vmem [thread:$0]  %s25_s23, 128, %s27_s30, [#allocation3]  }
  0x12   :  { %s49_s9 = sshll.u32 %s3555_s5, 4  ;;  %s3556_s10 = smov 128   ;;  %s50_s9 = int_to_ptr.vmem [resolvable:$true] %s49_s9 }
  0x13   :  { %s3557_s11 = smov 8   ;;  %s73_s15 = sshll.u32 %s3812_s4, 4  ;;  %s74_s15 = int_to_ptr.hbm [resolvable:$true] %s73_s15 }
  0x14   :  { %55 = dma.hbm_to_vmem [thread:$0]  %s48_s28, 256, %s50_s9, [#allocation6], %s3556_s10, %s3556_s10, %s3557_s11  }
  0x15   :  { %s3558_s16 = smov [#allocation10]   ;;  %s100_s18 = sshll.u32 %s3814_s6, 4  ;;  %s101_s18 = int_to_ptr.hbm [resolvable:$true] %s100_s18 }
  0x16   :  { %s75_s1 = sshll.u32 %s3558_s16, 4  ;;  %s3559_s19 = smov [#allocation13]   ;;  %s76_s1 = int_to_ptr.vmem [resolvable:$true] %s75_s1 }
  0x17   :  { %81 = dma.hbm_to_vmem [thread:$0]  %s74_s15, 512, %s76_s1, [#allocation9], %s3552_s24, %s3552_s24, %s3553_s25  }
  0x18   :  { %s102_s20 = sshll.u32 %s3559_s19, 4  ;;  %s110_s22 = sshll.u32 %s3815_s7, 4  ;;  %s103_s20 = int_to_ptr.vmem [resolvable:$true] %s102_s20  ;;  %s111_s22 = int_to_ptr.hbm [resolvable:$true] %s110_s22 }
  0x19   :  { %105 = dma.hbm_to_vmem [thread:$0]  %s101_s18, 256, %s103_s20, [#allocation12]  }
  0x1a   :  { %s3560_s4 = smov [#allocation14]  }
  0x1b   :  { %s112_s23 = sshll.u32 %s3560_s4, 4  ;;  %s113_s23 = int_to_ptr.vmem [resolvable:$true] %s112_s23 }
  0x1c   :  { %118 = dma.hbm_to_vmem [thread:$0]  %s111_s22, 2048, %s113_s23, [#allocation15], %s3547_s13, %s3547_s13, %s3548_s14  }
  0x1d   :  { %3534 = dma.done.wait [#allocation3], 128  }
  0x1e   :  { %3535 = vsyncadd [#allocation3], 4294967168 }
  0x1f   :  { %3536 = dma.done.wait [#allocation6], 768  }
  0x20   :  { %3537 = vsyncadd [#allocation6], 4294966528 }
  0x21   :  { %3538 = dma.done.wait [#allocation9], 16896  }
  0x22   :  { %3539 = vsyncadd [#allocation9], 4294950400 }
  0x23   :  { %3540 = dma.done.wait [#allocation12], 1280  }
  0x24   :  { %3541 = vsyncadd [#allocation12], 4294966016 }
  0x25   :  { %3542 = dma.done.wait [#allocation15], 2048  }
  0x26   :  { %3543 = vsyncadd [#allocation15], 4294965248  ;;  %v3115_v0 = vld [vmem:[#allocation5 + $0x8] sm:$0xff]  ;;  %v3114_v1 = vld [vmem:[#allocation5] sm:$0xff]  ;;  %vm172_vm0 = vcmask 261120   ;;  %v3561_v10 = vmov 32.0  }
  0x27   :  { %v152_v2 = vld [vmem:[#allocation2] sm:$0xff]  ;;  %182 = vmatpush.bf16.msra.mxu0 %v3115_v0  ;;  %v3290_v4 = vld [vmem:[#allocation7] ss:$0 sm:$0xff]  ;;  %3304 = vrcp.f32 %v3561_v10  ;;  %v2527_v22 = vld [vmem:[#allocation8 + $0x80] sm:$0xf]  ;;  %s3563_s6 = smov [#allocation16]  }
  0x28   :  { %v153_v3 = vpack.c.bf16 %v152_v2, %v152_v2  ;;  %v3140_v23 = vld [vmem:[#allocation8 + $0xbc] sm:$0xf0]  ;;  %v3132_v24 = vld [vmem:[#allocation8 + $0x84] sm:$0xf]  ;;  %v2535_v27 = vld [vmem:[#allocation8 + $0x88] sm:$0xf] }
  0x29   :  { %v2528_v25 = vor.u32 %v3140_v23, %v2527_v22  ;;  %v2529_v26 = vld [vmem:[#allocation8 + $0xc0] sm:$0xf0]  ;;  %v3141_v28 = vld [vmem:[#allocation8 + $0xc4] sm:$0xf0]  ;;  %v3133_v31 = vld [vmem:[#allocation8 + $0x8c] sm:$0xf] }
  0x2a   :  { %v2532_v29 = vor.u32 %v3132_v24, %v2529_v26  ;;  %v2536_v30 = vor.u32 %v3141_v28, %v2535_v27  ;;  %v2537_v32 = vld [vmem:[#allocation8 + $0xc8] sm:$0xf0]  ;;  %v2463_v34 = vld [vmem:[#allocation8] sm:$0xf]  ;;  %v3116_v36 = vld [vmem:[#allocation8 + $0x4] sm:$0xf] }
  0x2b   :  { %183 = vmatpush.bf16.msra.mxu0 %v3114_v1  ;;  %495 = vmatpush.bf16.msra.mxu1 %v2528_v25  ;;  %v2540_v33 = vor.u32 %v3133_v31, %v2537_v32  ;;  %v3124_v35 = vld [vmem:[#allocation8 + $0x3c] sm:$0xf0]  ;;  %v2465_v38 = vld [vmem:[#allocation8 + $0x40] sm:$0xf0]  ;;  %v2471_v39 = vld [vmem:[#allocation8 + $0x8] sm:$0xf] }
  0x2c   :  { %508 = vmatpush.bf16.msra.mxu2 %v2532_v29  ;;  %521 = vmatpush.bf16.msra.mxu3 %v2536_v30  ;;  %v2464_v37 = vor.u32 %v3124_v35, %v2463_v34  ;;  %v3125_v40 = vld [vmem:[#allocation8 + $0x44] sm:$0xf0]  ;;  %v2468_v41 = vor.u32 %v3116_v36, %v2465_v38  ;;  %v3117_v43 = vld [vmem:[#allocation8 + $0xc] sm:$0xf]  ;;  %v3134_v47 = vld [vmem:[#allocation8 + $0x94] sm:$0xf] }
  0x2d   :  { %v3305_v11 = vpop.eup %3304  ;;  %v2472_v42 = vor.u32 %v3125_v40, %v2471_v39  ;;  %v2473_v44 = vld [vmem:[#allocation8 + $0x48] sm:$0xf0]  ;;  %v2545_v48 = vld [vmem:[#allocation8 + $0xd0] sm:$0xf0]  ;;  %v2551_v49 = vld [vmem:[#allocation8 + $0x98] sm:$0xf] }
  0x2e   :  { %2460 = vmatmul.msk.bf16.vlgmr.msra.gmra.mxu0 %vm172_vm0, %v153_v3  ;;  %v196_v12 = vmul.f32 32.0, %v3305_v11  ;;  %vm200_vm1 = vweird.f32 %v3305_v11  ;;  %v2476_v45 = vor.u32 %v3117_v43, %v2473_v44  ;;  %v2548_v51 = vor.u32 %v3134_v47, %v2545_v48  ;;  %v3143_v52 = vld [vmem:[#allocation8 + $0xd4] sm:$0xf0]  ;;  %v3118_v53 = vld [vmem:[#allocation8 + $0x14] sm:$0xf]  ;;  %s2436_s7 = sshll.u32 %s3563_s6, 4  ;;  %s2437_s7 = int_to_ptr.vmem [resolvable:$true] %s2436_s7 }
  0x2f   :  { %534 = vmatpush.bf16.msrb.mxu0 %v2540_v33  ;;  %496 = vmatpush.bf16.msra.mxu1 %v2464_v37  ;;  %v2481_v54 = vld [vmem:[#allocation8 + $0x50] sm:$0xf0]  ;;  %v2552_v55 = vor.u32 %v3143_v52, %v2551_v49  ;;  %v2543_v56 = vld [vmem:[#allocation8 + $0x90] sm:$0xf]  ;;  %v3135_v58 = vld [vmem:[#allocation8 + $0x9c] sm:$0xf] }
  0x30   :  { %v197_v13 = vsub.f32 1.0, %v196_v12  ;;  %509 = vmatpush.bf16.msra.mxu2 %v2468_v41  ;;  %522 = vmatpush.bf16.msra.mxu3 %v2472_v42  ;;  %v3142_v57 = vld [vmem:[#allocation8 + $0xcc] sm:$0xf0]  ;;  %v2484_v60 = vor.u32 %v3118_v53, %v2481_v54  ;;  %v2553_v62 = vld [vmem:[#allocation8 + $0xd8] sm:$0xf0]  ;;  %s2438_s24 = sshll.u32 %s3816_s8, 4  ;;  %s2439_s24 = int_to_ptr.hbm [resolvable:$true] %s2438_s24 }
  0x31   :  { %v2544_v61 = vor.u32 %v3142_v57, %v2543_v56  ;;  %v2487_v63 = vld [vmem:[#allocation8 + $0x18] sm:$0xf]  ;;  %v2556_v0 = vor.u32 %v3135_v58, %v2553_v62  ;;  %v3126_v3 = vld [vmem:[#allocation8 + $0x4c] sm:$0xf0]  ;;  %v3136_v22 = vld [vmem:[#allocation8 + $0xa4] sm:$0xf] }
  0x32   :  { %v198_v14 = vmul.f32 %v3305_v11, %v197_v13  ;;  %v3127_v1 = vld [vmem:[#allocation8 + $0x54] sm:$0xf0]  ;;  %v2561_v23 = vld [vmem:[#allocation8 + $0xe0] sm:$0xf0]  ;;  %v2567_v24 = vld [vmem:[#allocation8 + $0xa8] sm:$0xf] }
  0x33   :  { %535 = vmatpush.bf16.msrb.mxu0 %v2476_v45  ;;  %547 = vmatpush.bf16.msrb.mxu1 %v2544_v61  ;;  %v3145_v25 = vld [vmem:[#allocation8 + $0xe4] sm:$0xf0]  ;;  %v2559_v26 = vld [vmem:[#allocation8 + $0xa0] sm:$0xf]  ;;  %v3137_v29 = vld [vmem:[#allocation8 + $0xac] sm:$0xf]  ;;  %v2564_v32 = vor.u32 %v3136_v22, %v2561_v23 }
  0x34   :  { %v199_v15 = vadd.f32 %v3305_v11, %v198_v14  ;;  %560 = vmatpush.bf16.msrb.mxu2 %v2548_v51  ;;  %573 = vmatpush.bf16.msrb.mxu3 %v2552_v55  ;;  %v3144_v28 = vld [vmem:[#allocation8 + $0xdc] sm:$0xf0]  ;;  %v2569_v30 = vld [vmem:[#allocation8 + $0xe8] sm:$0xf0]  ;;  %v2568_v33 = vor.u32 %v3145_v25, %v2567_v24  ;;  %v3120_v34 = vld [vmem:[#allocation8 + $0x24] sm:$0xf] }
  0x35   :  { %v2497_v35 = vld [vmem:[#allocation8 + $0x60] sm:$0xf0]  ;;  %v2572_v36 = vor.u32 %v3137_v29, %v2569_v30  ;;  %v2503_v37 = vld [vmem:[#allocation8 + $0x28] sm:$0xf]  ;;  %v2495_v39 = vld [vmem:[#allocation8 + $0x20] sm:$0xf] }
  0x36   :  { %v3642_v16 = vsel %vm200_vm1, %v3305_v11, %v199_v15  ;;  %v3291_v15 = vld [vmem:[#allocation7 + $0x1] ss:$0 sm:$0xff]  ;;  %v3129_v38 = vld [vmem:[#allocation8 + $0x64] sm:$0xf0]  ;;  %v3128_v40 = vld [vmem:[#allocation8 + $0x5c] sm:$0xf0]  ;;  %v2500_v43 = vor.u32 %v3120_v34, %v2497_v35 }
  0x37   :  { %586 = vmatpush.bf16.msra.mxu0 %v2556_v0  ;;  %v3121_v41 = vld [vmem:[#allocation8 + $0x2c] sm:$0xf]  ;;  %v2504_v44 = vor.u32 %v3129_v38, %v2503_v37  ;;  %v2496_v45 = vor.u32 %v3128_v40, %v2495_v39  ;;  %v3138_v47 = vld [vmem:[#allocation8 + $0xb4] sm:$0xf]  ;;  %v2583_v49 = vld [vmem:[#allocation8 + $0xb8] sm:$0xf] }
  0x38   :  { %561 = vmatpush.bf16.msrb.mxu2 %v2484_v60  ;;  %v2505_v42 = vld [vmem:[#allocation8 + $0x68] sm:$0xf0]  ;;  %v2577_v48 = vld [vmem:[#allocation8 + $0xf0] sm:$0xf0]  ;;  %v2575_v51 = vld [vmem:[#allocation8 + $0xb0] sm:$0xf] }
  0x39   :  { %v3146_v52 = vld [vmem:[#allocation8 + $0xec] sm:$0xf0]  ;;  %v3139_v53 = vld [vmem:[#allocation8 + $0xbc] sm:$0xf]  ;;  %v2580_v55 = vor.u32 %v3138_v47, %v2577_v48  ;;  %v3122_v57 = vld [vmem:[#allocation8 + $0x34] sm:$0xf] }
  0x3a   :  { %v2585_v54 = vld [vmem:[#allocation8 + $0xf8] sm:$0xf0]  ;;  %v2513_v58 = vld [vmem:[#allocation8 + $0x70] sm:$0xf0]  ;;  %v2519_v61 = vld [vmem:[#allocation8 + $0x38] sm:$0xf] }
  0x3b   :  { %v2588_v60 = vor.u32 %v3139_v53, %v2585_v54  ;;  %v3131_v62 = vld [vmem:[#allocation8 + $0x74] sm:$0xf0]  ;;  %v3130_v0 = vld [vmem:[#allocation8 + $0x6c] sm:$0xf0]  ;;  %v3156_v22 = vld [vmem:[#allocation8 + $0x13c] sm:$0xf0] }
  0x3c   :  { %v3149_v23 = vld [vmem:[#allocation8 + $0x10c] sm:$0xf]  ;;  %v2609_v29 = vld [vmem:[#allocation8 + $0x140] sm:$0xf0]  ;;  %v2615_v30 = vld [vmem:[#allocation8 + $0x108] sm:$0xf] }
  0x3d   :  { %v2617_v25 = vld [vmem:[#allocation8 + $0x148] sm:$0xf0]  ;;  %v2687_v35 = vld [vmem:[#allocation8 + $0x190] sm:$0xf]  ;;  %v3167_v37 = vld [vmem:[#allocation8 + $0x19c] sm:$0xf] }
  0x3e   :  { %v3166_v39 = vld [vmem:[#allocation8 + $0x194] sm:$0xf]  ;;  %v3151_v47 = vld [vmem:[#allocation8 + $0x11c] sm:$0xf]  ;;  %v2631_v53 = vld [vmem:[#allocation8 + $0x118] sm:$0xf] }
  0x3f   :  { %v2689_v40 = vld [vmem:[#allocation8 + $0x1d0] sm:$0xf0] }
  0xab   :  { %v185_v5 = vpop.f32.mrf.mxu0 }
  0xac   :  { %v186_v6 = vadd.f32 %v3290_v4, %v185_v5  ;;  %v2488_v4 = vor.u32 %v3127_v1, %v2487_v63  ;;  %v2511_v63 = vld [vmem:[#allocation8 + $0x30] sm:$0xf]  ;;  %v3123_v1 = vld [vmem:[#allocation8 + $0x3c] sm:$0xf] }
  0xae   :  { %v189_v7 = vadd.f32 %v186_v6, %v152_v2  ;;  %v2479_v2 = vld [vmem:[#allocation8 + $0x10] sm:$0xf]  ;;  %v3119_v6 = vld [vmem:[#allocation8 + $0x1c] sm:$0xf]  ;;  %574 = vmatpush.bf16.msrb.mxu3 %v2488_v4  ;;  %v2520_v4 = vor.u32 %v3131_v62, %v2519_v61 }
  0xaf   :  { %v2480_v5 = vor.u32 %v3126_v3, %v2479_v2  ;;  %v2521_v2 = vld [vmem:[#allocation8 + $0x78] sm:$0xf0]  ;;  %v2516_v3 = vor.u32 %v3122_v57, %v2513_v58  ;;  %v3690_v57 = vld [vmem:[#allocation10] sm:$0xff] }
  0xb0   :  { %v192_v8 = vsel %vm172_vm0, %v189_v7, 0.0  ;;  %v294_v58 = vperm.slane %v3690_v57, 0 }
  0xb1   :  { %193 = vadd.xlane.f32.xlu0 %v192_v8  ;;  %548 = vmatpush.bf16.msrb.mxu1 %v2480_v5  ;;  %v2512_v5 = vor.u32 %v3130_v0, %v2511_v63  ;;  %v2703_v63 = vld [vmem:[#allocation8 + $0x1a0] sm:$0xf] }
  0xb2   :  { %v3176_v0 = vld [vmem:[#allocation8 + $0x1dc] sm:$0xf0] }
  0xb3   :  { %v187_v9 = vpop.f32.mrf.mxu0 }
 0x124   :  { %v194_v17 = vpop.xlane.xlu0 %193 }
 0x125   :  { %v202_v18 = vmul.f32 %v3642_v16, %v194_v17 }
 0x127   :  { %v3645_v19 = vsub.f32 %v189_v7, %v202_v18  ;;  %v2489_v7 = vld [vmem:[#allocation8 + $0x58] sm:$0xf0]  ;;  %v3292_v18 = vld [vmem:[#allocation7 + $0x2] ss:$0 sm:$0xff] }
 0x128   :  { %v2492_v8 = vor.u32 %v3119_v6, %v2489_v7  ;;  %v2524_v6 = vor.u32 %v3123_v1, %v2521_v2  ;;  %v2671_v7 = vld [vmem:[#allocation8 + $0x180] sm:$0xf]  ;;  %v3169_v2 = vld [vmem:[#allocation8 + $0x1ac] sm:$0xf] }
 0x129   :  { %v204_v20 = vmul.f32 %v3645_v19, %v3645_v19 }
 0x12a   :  { %587 = vmatpush.bf16.msra.mxu0 %v2492_v8  ;;  %v3172_v8 = vld [vmem:[#allocation8 + $0x1bc] sm:$0xf0] }
 0x12b   :  { %v205_v21 = vsel %vm172_vm0, %v204_v20, 0.0 }
 0x12c   :  { %206 = vadd.xlane.f32.xlu0 %v205_v21 }
 0x19f   :  { %v207_v46 = vpop.xlane.xlu0 %206 }
 0x1a0   :  { %v208_v50 = vmul.f32 %v207_v46, %v3642_v16  ;;  %v2508_v46 = vor.u32 %v3121_v41, %v2505_v42  ;;  %v2695_v41 = vld [vmem:[#allocation8 + $0x198] sm:$0xf]  ;;  %v2692_v42 = vor.u32 %v3166_v39, %v2689_v40  ;;  %v3152_v40 = vld [vmem:[#allocation8 + $0x124] sm:$0xf] }
 0x1a2   :  { %v209_v59 = vadd.f32 1e-05, %v208_v50  ;;  %v3147_v50 = vld [vmem:[#allocation8 + $0xf4] sm:$0xf0] }
 0x1a3   :  { %v2584_v56 = vor.u32 %v3147_v50, %v2583_v49  ;;  %v2633_v49 = vld [vmem:[#allocation8 + $0x158] sm:$0xf0] }
 0x1a4   :  { %3306 = vrsqrt.f32 %v209_v59  ;;  %vm216_vm3 = vweird.f32 %v209_v59  ;;  %v2636_v50 = vor.u32 %v3151_v47, %v2633_v49  ;;  %v2719_v47 = vld [vmem:[#allocation8 + $0x1b0] sm:$0xf] }
 0x1aa   :  { %v3307_v9 = vpop.eup %3306 }
 0x1ab   :  { %v211_v10 = vmul.f32 %v3307_v9, %v209_v59  ;;  %vm217_vm2 = vweird.f32 %v3307_v9  ;;  %v2576_v59 = vor.u32 %v3146_v52, %v2575_v51  ;;  %v3150_v51 = vld [vmem:[#allocation8 + $0x114] sm:$0xf] }
 0x1ac   :  { %vm218_vm4 = vmor %vm216_vm3, %vm217_vm2  ;;  %v2625_v52 = vld [vmem:[#allocation8 + $0x150] sm:$0xf0] }
 0x1ad   :  { %v212_v11 = vmul.f32 %v3307_v9, %v211_v10  ;;  %v2681_v10 = vld [vmem:[#allocation8 + $0x1c8] sm:$0xf0]  ;;  %v2628_v54 = vor.u32 %v3150_v51, %v2625_v52  ;;  %v3171_v51 = vld [vmem:[#allocation8 + $0x1bc] sm:$0xf] }
 0x1ae   :  { %v2729_v52 = vld [vmem:[#allocation8 + $0x1f8] sm:$0xf0] }
 0x1af   :  { %v213_v12 = vmul.f32 0.5, %v212_v11  ;;  %v3164_v11 = vld [vmem:[#allocation8 + $0x184] sm:$0xf] }
 0x1b1   :  { %v214_v13 = vsub.f32 1.5, %v213_v12  ;;  %v2673_v12 = vld [vmem:[#allocation8 + $0x1c0] sm:$0xf0] }
 0x1b3   :  { %v215_v14 = vmul.f32 %v3307_v9, %v214_v13  ;;  %v2679_v13 = vld [vmem:[#allocation8 + $0x188] sm:$0xf] }
 0x1b5   :  { %v219_v17 = vsel %vm218_vm4, %v3307_v9, %v215_v14  ;;  %v3165_v9 = vld [vmem:[#allocation8 + $0x18c] sm:$0xf]  ;;  %v3173_v14 = vld [vmem:[#allocation8 + $0x1c4] sm:$0xf0] }
 0x1b6   :  { %v220_v20 = vmul.f32 %v219_v17, %v3645_v19  ;;  %v2560_v19 = vor.u32 %v3144_v28, %v2559_v26  ;;  %v2684_v17 = vor.u32 %v3165_v9, %v2681_v10  ;;  %v2620_v26 = vor.u32 %v3149_v23, %v2617_v25  ;;  %v3148_v28 = vld [vmem:[#allocation8 + $0x104] sm:$0xf]  ;;  %v2639_v25 = vld [vmem:[#allocation8 + $0x120] sm:$0xf] }
 0x1b8   :  { %v222_v21 = vmul.f32 %v3291_v15, %v220_v20  ;;  %v2672_v15 = vor.u32 %v3172_v8, %v2671_v7  ;;  %v2680_v20 = vor.u32 %v3173_v14, %v2679_v13  ;;  %v296_v7 = vperm.slane %v3690_v57, 2 }
 0x1b9   :  { %v2704_v8 = vor.u32 %v3176_v0, %v2703_v63 }
 0x1ba   :  { %v3652_v27 = vadd.f32 %v3292_v18, %v222_v21  ;;  %v2676_v18 = vor.u32 %v3164_v11, %v2673_v12  ;;  %v2607_v21 = vld [vmem:[#allocation8 + $0x100] sm:$0xf] }
 0x1bb   :  { %v2608_v24 = vor.u32 %v3156_v22, %v2607_v21  ;;  %v2711_v21 = vld [vmem:[#allocation8 + $0x1a8] sm:$0xf] }
 0x1bc   :  { %v3656_v31 = vpack.c.bf16 %v3652_v27, %v3652_v27  ;;  %v3177_v22 = vld [vmem:[#allocation8 + $0x1e4] sm:$0xf0] }
 0x1be   :  { %2589 = vmatmul.msk.bf16.vlgmr.msra.gmra.mxu1 %vm172_vm0, %v3656_v31  ;;  %2590 = vmatmul.msk.bf16.vlgmr.msra.gmra.mxu2 %vm172_vm0, %v3656_v31 }
 0x1bf   :  { %2591 = vmatmul.msk.bf16.vlgmr.msra.gmra.mxu3 %vm172_vm0, %v3656_v31  ;;  %2592 = vmatmul.msk.bf16.vlgmr.msrb.gmra.mxu0 %vm172_vm0, %v3656_v31 }
 0x1c0   :  { %612 = vmatpush.bf16.msra.mxu2 %v2564_v32  ;;  %625 = vmatpush.bf16.msra.mxu3 %v2568_v33  ;;  %v2612_v32 = vor.u32 %v3148_v28, %v2609_v29  ;;  %v3157_v33 = vld [vmem:[#allocation8 + $0x144] sm:$0xf0] }
 0x1c1   :  { %599 = vmatpush.bf16.msra.mxu1 %v2560_v19  ;;  %638 = vmatpush.bf16.msrb.mxu0 %v2572_v36  ;;  %v2616_v34 = vor.u32 %v3157_v33, %v2615_v30  ;;  %v3174_v19 = vld [vmem:[#allocation8 + $0x1cc] sm:$0xf0]  ;;  %v3153_v30 = vld [vmem:[#allocation8 + $0x12c] sm:$0xf] }
 0x1c2   :  { %v2688_v36 = vor.u32 %v3174_v19, %v2687_v35 }
 0x1c4   :  { %613 = vmatpush.bf16.msra.mxu2 %v2500_v43  ;;  %626 = vmatpush.bf16.msra.mxu3 %v2504_v44  ;;  %v3175_v43 = vld [vmem:[#allocation8 + $0x1d4] sm:$0xf0] }
 0x1c5   :  { %600 = vmatpush.bf16.msra.mxu1 %v2496_v45  ;;  %639 = vmatpush.bf16.msrb.mxu0 %v2508_v46  ;;  %v2696_v44 = vor.u32 %v3175_v43, %v2695_v41  ;;  %v2623_v45 = vld [vmem:[#allocation8 + $0x110] sm:$0xf]  ;;  %v2641_v41 = vld [vmem:[#allocation8 + $0x160] sm:$0xf0]  ;;  %v2647_v43 = vld [vmem:[#allocation8 + $0x128] sm:$0xf] }
 0x1c6   :  { %v3158_v46 = vld [vmem:[#allocation8 + $0x14c] sm:$0xf0] }
 0x1c7   :  { %v2624_v48 = vor.u32 %v3158_v46, %v2623_v45 }
 0x1ce   :  { %2593 = vmatmul.msk.bf16.vlgmr.msrb.gmra.mxu1 %vm172_vm0, %v3656_v31  ;;  %2594 = vmatmul.msk.bf16.vlgmr.msrb.gmra.mxu2 %vm172_vm0, %v3656_v31 }
 0x1cf   :  { %2595 = vmatmul.msk.bf16.vlgmr.msrb.gmra.mxu3 %vm172_vm0, %v3656_v31  ;;  %2596 = vmatmul.msk.bf16.vlgmr.msra.gmra.mxu0 %vm172_vm0, %v3656_v31 }
 0x1d0   :  { %664 = vmatpush.bf16.msrb.mxu2 %v2580_v55  ;;  %677 = vmatpush.bf16.msrb.mxu3 %v2584_v56  ;;  %v3159_v55 = vld [vmem:[#allocation8 + $0x154] sm:$0xf0] }
 0x1d1   :  { %651 = vmatpush.bf16.msrb.mxu1 %v2576_v59  ;;  %690 = vmatpush.bf16.msra.mxu0 %v2588_v60  ;;  %v2632_v56 = vor.u32 %v3159_v55, %v2631_v53  ;;  %v297_v59 = vperm.slane %v3690_v57, 3 }
 0x1d4   :  { %665 = vmatpush.bf16.msrb.mxu2 %v2516_v3  ;;  %678 = vmatpush.bf16.msrb.mxu3 %v2520_v4  ;;  %v2713_v3 = vld [vmem:[#allocation8 + $0x1e8] sm:$0xf0] }
 0x1d5   :  { %652 = vmatpush.bf16.msrb.mxu1 %v2512_v5  ;;  %691 = vmatpush.bf16.msra.mxu0 %v2524_v6  ;;  %v295_v5 = vperm.slane %v3690_v57, 1  ;;  %v2716_v10 = vor.u32 %v3169_v2, %v2713_v3  ;;  %v3170_v2 = vld [vmem:[#allocation8 + $0x1b4] sm:$0xf] }
 0x1d6   :  { %v2721_v3 = vld [vmem:[#allocation8 + $0x1f0] sm:$0xf0] }
 0x1de   :  { %2597 = vmatmul.msk.bf16.vlgmr.msra.gmra.mxu1 %vm172_vm0, %v3656_v31  ;;  %2598 = vmatmul.msk.bf16.vlgmr.msra.gmra.mxu2 %vm172_vm0, %v3656_v31 }
 0x1df   :  { %2599 = vmatmul.msk.bf16.vlgmr.msra.gmra.mxu3 %vm172_vm0, %v3656_v31  ;;  %2600 = vmatmul.msk.bf16.vlgmr.msrb.gmra.mxu0 %vm172_vm0, %v3656_v31 }
 0x1e0   :  { %897 = vmatpush.bf16.xpose.msra.mxu1 %v2672_v15  ;;  %936 = vmatpush.bf16.xpose.msrb.mxu0 %v2684_v17  ;;  %v3168_v15 = vld [vmem:[#allocation8 + $0x1a4] sm:$0xf] }
 0x1e1   :  { %910 = vmatpush.bf16.xpose.msra.mxu2 %v2676_v18  ;;  %923 = vmatpush.bf16.xpose.msra.mxu3 %v2680_v20  ;;  %v2705_v17 = vld [vmem:[#allocation8 + $0x1e0] sm:$0xf0] }
 0x1e2   :  { %v2708_v29 = vor.u32 %v3168_v15, %v2705_v17  ;;  %v2665_v15 = vld [vmem:[#allocation8 + $0x178] sm:$0xf0] }
 0x1e8   :  { %898 = vmatpush.bf16.xpose.msra.mxu1 %v2608_v24  ;;  %937 = vmatpush.bf16.xpose.msrb.mxu0 %v2620_v26  ;;  %v3160_v26 = vld [vmem:[#allocation8 + $0x15c] sm:$0xf0] }
 0x1e9   :  { %911 = vmatpush.bf16.xpose.msra.mxu2 %v2612_v32  ;;  %924 = vmatpush.bf16.xpose.msra.mxu3 %v2616_v34  ;;  %v2649_v32 = vld [vmem:[#allocation8 + $0x168] sm:$0xf0]  ;;  %v2712_v34 = vor.u32 %v3177_v22, %v2711_v21  ;;  %v2640_v19 = vor.u32 %v3160_v26, %v2639_v25 }
 0x1ee   :  { %2601 = vmatmul.msk.bf16.vlgmr.msrb.gmra.mxu1 %vm172_vm0, %v3656_v31  ;;  %2602 = vmatmul.msk.bf16.vlgmr.msrb.gmra.mxu2 %vm172_vm0, %v3656_v31 }
 0x1ef   :  { %2603 = vmatmul.msk.bf16.vlgmr.msrb.gmra.mxu3 %vm172_vm0, %v3656_v31  ;;  %2604 = vmatmul.msk.bf16.vlgmr.msra.gmra.mxu0 %vm172_vm0, %v3656_v31  ;;  %v2697_v31 = vld [vmem:[#allocation8 + $0x1d8] sm:$0xf0] }
 0x1f0   :  { %v2700_v38 = vor.u32 %v3167_v37, %v2697_v31  ;;  %949 = vmatpush.bf16.xpose.msrb.mxu1 %v2688_v36  ;;  %v298_v36 = vperm.slane %v3690_v57, 4  ;;  %v2652_v37 = vor.u32 %v3153_v30, %v2649_v32  ;;  %v2663_v32 = vld [vmem:[#allocation8 + $0x138] sm:$0xf] }
 0x1f1   :  { %962 = vmatpush.bf16.xpose.msrb.mxu2 %v2692_v42  ;;  %975 = vmatpush.bf16.xpose.msrb.mxu3 %v2696_v44  ;;  %v3161_v44 = vld [vmem:[#allocation8 + $0x164] sm:$0xf0] }
 0x1f2   :  { %988 = vmatpush.bf16.xpose.msra.mxu0 %v2700_v38  ;;  %v301_v38 = vperm.slane %v3690_v57, 7  ;;  %v2648_v55 = vor.u32 %v3161_v44, %v2647_v43 }
 0x1f8   :  { %950 = vmatpush.bf16.xpose.msrb.mxu1 %v2624_v48  ;;  %v3178_v48 = vld [vmem:[#allocation8 + $0x1ec] sm:$0xf0] }
 0x1f9   :  { %963 = vmatpush.bf16.xpose.msrb.mxu2 %v2628_v54  ;;  %976 = vmatpush.bf16.xpose.msrb.mxu3 %v2632_v56  ;;  %v299_v54 = vperm.slane %v3690_v57, 5 }
 0x1fa   :  { %989 = vmatpush.bf16.xpose.msra.mxu0 %v2636_v50  ;;  %v2644_v50 = vor.u32 %v3152_v40, %v2641_v41 }
 0x23b   :  { %v498_v60 = vpop.f32.mrf.mxu1 }
 0x23c   :  { %v499_v61 = vadd.f32 %v498_v60, %v294_v58  ;;  %v537_v62 = vpop.f32.mrf.mxu0  ;;  %v300_v58 = vperm.slane %v3690_v57, 6 }
 0x23d   :  { %v538_v1 = vadd.f32 %v537_v62, %v297_v59  ;;  %v2720_v59 = vor.u32 %v3178_v48, %v2719_v47 }
 0x23e   :  { %v697_v4 = vmax.f32 %v499_v61, 0.0  ;;  %v2732_v61 = vor.u32 %v3171_v51, %v2729_v52 }
 0x23f   :  { %v700_v6 = vmax.f32 %v538_v1, 0.0 }
 0x240   :  { %v713_v9 = vpack.c.bf16 %v697_v4, %v697_v4 }
 0x241   :  { %v716_v11 = vpack.c.bf16 %v700_v6, %v700_v6  ;;  %v511_v12 = vpop.f32.mrf.mxu2  ;;  %v2727_v6 = vld [vmem:[#allocation8 + $0x1b8] sm:$0xf] }
 0x242   :  { %v512_v13 = vadd.f32 %v511_v12, %v295_v5  ;;  %v524_v14 = vpop.f32.mrf.mxu3  ;;  %899 = vmatmul.bf16.vlgmr.msra.gmra.mxu1 %v713_v9  ;;  %v2655_v9 = vld [vmem:[#allocation8 + $0x130] sm:$0xf]  ;;  %v3700_v12 = vld [vmem:[#allocation10 + $0x8] sm:$0xff] }
 0x243   :  { %v525_v18 = vadd.f32 %v524_v14, %v296_v7  ;;  %938 = vmatmul.bf16.vlgmr.msrb.gmra.mxu0 %v716_v11  ;;  %v500_v20 = vpop.f32.mrf.mxu1  ;;  %1001 = vmatpush.bf16.xpose.msra.mxu1 %v2704_v8  ;;  %v3179_v7 = vld [vmem:[#allocation8 + $0x1f4] sm:$0xf0]  ;;  %v3155_v14 = vld [vmem:[#allocation8 + $0x13c] sm:$0xf]  ;;  %v302_v22 = vperm.slane %v3700_v12, 0  ;;  %v305_v25 = vperm.slane %v3700_v12, 3 }
 0x244   :  { %v698_v23 = vmax.f32 %v512_v13, 0.0  ;;  %v539_v24 = vpop.f32.mrf.mxu0  ;;  %1040 = vmatpush.bf16.xpose.msrb.mxu0 %v2716_v10  ;;  %v3162_v10 = vld [vmem:[#allocation8 + $0x16c] sm:$0xf0]  ;;  %v2724_v13 = vor.u32 %v3170_v2, %v2721_v3  ;;  %v304_v40 = vperm.slane %v3700_v12, 2 }
 0x245   :  { %v699_v28 = vmax.f32 %v525_v18, 0.0  ;;  %v2728_v18 = vor.u32 %v3179_v7, %v2727_v6  ;;  %v2656_v21 = vor.u32 %v3162_v10, %v2655_v9 }
 0x246   :  { %v714_v33 = vpack.c.bf16 %v698_v23, %v698_v23  ;;  %v2668_v23 = vor.u32 %v3155_v14, %v2665_v15 }
 0x247   :  { %v715_v35 = vpack.c.bf16 %v699_v28, %v699_v28  ;;  %v3154_v28 = vld [vmem:[#allocation8 + $0x134] sm:$0xf] }
 0x248   :  { %912 = vmatmul.bf16.vlgmr.msra.gmra.mxu2 %v714_v33  ;;  %v3163_v33 = vld [vmem:[#allocation8 + $0x174] sm:$0xf0] }
 0x249   :  { %925 = vmatmul.bf16.vlgmr.msra.gmra.mxu3 %v715_v35  ;;  %v513_v31 = vpop.f32.mrf.mxu2  ;;  %1014 = vmatpush.bf16.xpose.msra.mxu2 %v2708_v29  ;;  %v2657_v29 = vld [vmem:[#allocation8 + $0x170] sm:$0xf0] }
 0x24a   :  { %v526_v39 = vpop.f32.mrf.mxu3  ;;  %1027 = vmatpush.bf16.xpose.msra.mxu3 %v2712_v34  ;;  %v303_v31 = vperm.slane %v3700_v12, 1 }
 0x24b   :  { %v550_v42 = vpop.f32.mrf.mxu1  ;;  %1002 = vmatpush.bf16.xpose.msra.mxu1 %v2640_v19 }
 0x24c   :  { %v551_v45 = vadd.f32 %v550_v42, %v298_v36  ;;  %v589_v46 = vpop.f32.mrf.mxu0  ;;  %1041 = vmatpush.bf16.xpose.msrb.mxu0 %v2652_v37  ;;  %v2660_v36 = vor.u32 %v3154_v28, %v2657_v29 }
 0x24d   :  { %v590_v49 = vadd.f32 %v589_v46, %v301_v38  ;;  %v2664_v38 = vor.u32 %v3163_v33, %v2663_v32 }
 0x24e   :  { %v701_v53 = vmax.f32 %v551_v45, 0.0 }
 0x24f   :  { %v704_v56 = vmax.f32 %v590_v49, 0.0 }
 0x250   :  { %v717_v60 = vpack.c.bf16 %v701_v53, %v701_v53  ;;  %v306_v53 = vperm.slane %v3700_v12, 4 }
 0x251   :  { %v720_v62 = vpack.c.bf16 %v704_v56, %v704_v56  ;;  %v563_v63 = vpop.f32.mrf.mxu2  ;;  %1015 = vmatpush.bf16.xpose.msra.mxu2 %v2644_v50 }
 0x252   :  { %v564_v0 = vadd.f32 %v563_v63, %v299_v54  ;;  %v576_v1 = vpop.f32.mrf.mxu3  ;;  %951 = vmatmul.bf16.vlgmr.msrb.gmra.mxu1 %v717_v60  ;;  %1028 = vmatpush.bf16.xpose.msra.mxu3 %v2648_v55  ;;  %v309_v55 = vperm.slane %v3700_v12, 7  ;;  %v307_v63 = vperm.slane %v3700_v12, 5 }
 0x253   :  { %v577_v4 = vadd.f32 %v576_v1, %v300_v58  ;;  %990 = vmatmul.bf16.vlgmr.msra.gmra.mxu0 %v720_v62  ;;  %v552_v5 = vpop.f32.mrf.mxu1  ;;  %1053 = vmatpush.bf16.xpose.msrb.mxu1 %v2720_v59  ;;  %v308_v1 = vperm.slane %v3700_v12, 6 }
 0x254   :  { %v702_v8 = vmax.f32 %v564_v0, 0.0  ;;  %v591_v57 = vpop.f32.mrf.mxu0  ;;  %1092 = vmatpush.bf16.xpose.msra.mxu0 %v2732_v61 }
 0x255   :  { %v703_v11 = vmax.f32 %v577_v4, 0.0 }
 0x256   :  { %v718_v17 = vpack.c.bf16 %v702_v8, %v702_v8 }
 0x257   :  { %v719_v20 = vpack.c.bf16 %v703_v11, %v703_v11 }
 0x258   :  { %964 = vmatmul.bf16.vlgmr.msrb.gmra.mxu2 %v718_v17 }
 0x259   :  { %977 = vmatmul.bf16.vlgmr.msrb.gmra.mxu3 %v719_v20  ;;  %v565_v24 = vpop.f32.mrf.mxu2  ;;  %1066 = vmatpush.bf16.xpose.msrb.mxu2 %v2724_v13 }
 0x25a   :  { %v578_v26 = vpop.f32.mrf.mxu3  ;;  %1079 = vmatpush.bf16.xpose.msrb.mxu3 %v2728_v18 }
 0x25b   :  { %v602_v30 = vpop.f32.mrf.mxu1  ;;  %1054 = vmatpush.bf16.xpose.msrb.mxu1 %v2656_v21 }
 0x25c   :  { %v603_v34 = vadd.f32 %v602_v30, %v302_v22  ;;  %v641_v35 = vpop.f32.mrf.mxu0  ;;  %1093 = vmatpush.bf16.xpose.msra.mxu0 %v2668_v23  ;;  %v3293_v22 = vld [vmem:[#allocation7 + $0x3] ss:$0 sm:$0xff] }
 0x25d   :  { %v642_v19 = vadd.f32 %v641_v35, %v305_v25 }
 0x25e   :  { %v705_v37 = vmax.f32 %v603_v34, 0.0 }
 0x25f   :  { %v708_v39 = vmax.f32 %v642_v19, 0.0 }
 0x260   :  { %v721_v41 = vpack.c.bf16 %v705_v37, %v705_v37 }
 0x261   :  { %v724_v42 = vpack.c.bf16 %v708_v39, %v708_v39  ;;  %v615_v43 = vpop.f32.mrf.mxu2  ;;  %1067 = vmatpush.bf16.xpose.msrb.mxu2 %v2660_v36 }
 0x262   :  { %v616_v44 = vadd.f32 %v615_v43, %v303_v31  ;;  %v628_v45 = vpop.f32.mrf.mxu3  ;;  %1003 = vmatmul.bf16.vlgmr.msra.gmra.mxu1 %v721_v41  ;;  %1080 = vmatpush.bf16.xpose.msrb.mxu3 %v2664_v38 }
 0x263   :  { %v629_v46 = vadd.f32 %v628_v45, %v304_v40  ;;  %1042 = vmatmul.bf16.vlgmr.msrb.gmra.mxu0 %v724_v42  ;;  %v604_v47 = vpop.f32.mrf.mxu1 }
 0x264   :  { %v706_v48 = vmax.f32 %v616_v44, 0.0  ;;  %v643_v49 = vpop.f32.mrf.mxu0 }
 0x265   :  { %v707_v50 = vmax.f32 %v629_v46, 0.0 }
 0x266   :  { %v722_v51 = vpack.c.bf16 %v706_v48, %v706_v48 }
 0x267   :  { %v723_v52 = vpack.c.bf16 %v707_v50, %v707_v50 }
 0x268   :  { %1016 = vmatmul.bf16.vlgmr.msra.gmra.mxu2 %v722_v51 }
 0x269   :  { %1029 = vmatmul.bf16.vlgmr.msra.gmra.mxu3 %v723_v52  ;;  %v617_v54 = vpop.f32.mrf.mxu2 }
 0x26a   :  { %v630_v56 = vpop.f32.mrf.mxu3 }
 0x26b   :  { %v654_v58 = vpop.f32.mrf.mxu1 }
 0x26c   :  { %v655_v59 = vadd.f32 %v654_v58, %v306_v53  ;;  %v693_v60 = vpop.f32.mrf.mxu0 }
 0x26d   :  { %v694_v61 = vadd.f32 %v693_v60, %v309_v55 }
 0x26e   :  { %v709_v62 = vmax.f32 %v655_v59, 0.0 }
 0x26f   :  { %v712_v0 = vmax.f32 %v694_v61, 0.0 }
 0x270   :  { %v725_v2 = vpack.c.bf16 %v709_v62, %v709_v62 }
 0x271   :  { %v728_v3 = vpack.c.bf16 %v712_v0, %v712_v0  ;;  %v667_v4 = vpop.f32.mrf.mxu2 }
 0x272   :  { %v668_v5 = vadd.f32 %v667_v4, %v307_v63  ;;  %v680_v6 = vpop.f32.mrf.mxu3  ;;  %1055 = vmatmul.bf16.vlgmr.msrb.gmra.mxu1 %v725_v2 }
 0x273   :  { %v681_v7 = vadd.f32 %v680_v6, %v308_v1  ;;  %1094 = vmatmul.bf16.vlgmr.msra.gmra.mxu0 %v728_v3  ;;  %v656_v8 = vpop.f32.mrf.mxu1 }
 0x274   :  { %v710_v57 = vmax.f32 %v668_v5, 0.0  ;;  %v695_v9 = vpop.f32.mrf.mxu0 }
 0x275   :  { %v711_v10 = vmax.f32 %v681_v7, 0.0  ;;  %v3181_v9 = vld [vmem:[#allocation5 + $0x18] sm:$0xff] }
 0x276   :  { %v726_v11 = vpack.c.bf16 %v710_v57, %v710_v57  ;;  %1158 = vmatpush.bf16.msra.mxu1 %v3181_v9  ;;  %v2832_v9 = vld [vmem:[#allocation8 + $0x298] sm:$0xf] }
 0x277   :  { %v727_v13 = vpack.c.bf16 %v711_v10, %v711_v10  ;;  %v3180_v10 = vld [vmem:[#allocation5 + $0x10] sm:$0xff] }
 0x278   :  { %1068 = vmatmul.bf16.vlgmr.msrb.gmra.mxu2 %v726_v11 }
 0x279   :  { %1081 = vmatmul.bf16.vlgmr.msrb.gmra.mxu3 %v727_v13  ;;  %v669_v14 = vpop.f32.mrf.mxu2 }
 0x27a   :  { %v682_v15 = vpop.f32.mrf.mxu3  ;;  %1159 = vmatpush.bf16.msra.mxu1 %v3180_v10  ;;  %v3209_v10 = vld [vmem:[#allocation8 + $0x2d4] sm:$0xf0] }
 0x2bf   :  { %v900_v17 = vpop.f32.mrf.mxu1 }
 0x2c0   :  { %v939_v12 = vpop.f32.mrf.mxu0  ;;  %v901_v25 = vadd.f32 %v3293_v22, %v900_v17 }
 0x2c7   :  { %v902_v18 = vpop.f32.mrf.mxu1 }
 0x2c8   :  { %v941_v20 = vpop.f32.mrf.mxu0 }
 0x2cb   :  { %v913_v21 = vpop.f32.mrf.mxu2 }
 0x2cc   :  { %v926_v23 = vpop.f32.mrf.mxu3  ;;  %v914_v28 = vadd.f32 %v913_v21, %v901_v25  ;;  %v3294_v21 = vld [vmem:[#allocation7 + $0x4] ss:$0 sm:$0xff] }
 0x2ce   :  { %v927_v32 = vadd.f32 %v926_v23, %v914_v28  ;;  %v3295_v23 = vld [vmem:[#allocation7 + $0x5] ss:$0 sm:$0xff] }
 0x2cf   :  { %v952_v24 = vpop.f32.mrf.mxu1 }
 0x2d0   :  { %v991_v26 = vpop.f32.mrf.mxu0  ;;  %v940_v35 = vadd.f32 %v939_v12, %v927_v32 }
 0x2d2   :  { %v953_v37 = vadd.f32 %v952_v24, %v940_v35 }
 0x2d3   :  { %v915_v29 = vpop.f32.mrf.mxu2 }
 0x2d4   :  { %v928_v30 = vpop.f32.mrf.mxu3  ;;  %v3296_v29 = vld [vmem:[#allocation7 + $0x8] ss:$0 sm:$0xff] }
 0x2d7   :  { %v954_v33 = vpop.f32.mrf.mxu1 }
 0x2d8   :  { %v993_v34 = vpop.f32.mrf.mxu0 }
 0x2db   :  { %v965_v19 = vpop.f32.mrf.mxu2 }
 0x2dc   :  { %v978_v36 = vpop.f32.mrf.mxu3  ;;  %v966_v38 = vadd.f32 %v965_v19, %v953_v37 }
 0x2de   :  { %v979_v41 = vadd.f32 %v978_v36, %v966_v38 }
 0x2df   :  { %v1004_v31 = vpop.f32.mrf.mxu1 }
 0x2e0   :  { %v1043_v39 = vpop.f32.mrf.mxu0  ;;  %v992_v44 = vadd.f32 %v991_v26, %v979_v41  ;;  %v3198_v41 = vld [vmem:[#allocation8 + $0x284] sm:$0xf] }
 0x2e2   :  { %v1005_v47 = vadd.f32 %v1004_v31, %v992_v44  ;;  %v2816_v44 = vld [vmem:[#allocation8 + $0x288] sm:$0xf] }
 0x2e3   :  { %v967_v40 = vpop.f32.mrf.mxu2 }
 0x2e4   :  { %v980_v42 = vpop.f32.mrf.mxu3  ;;  %v3206_v40 = vld [vmem:[#allocation8 + $0x2bc] sm:$0xf0] }
 0x2e7   :  { %v1006_v43 = vpop.f32.mrf.mxu1 }
 0x2e8   :  { %v1045_v45 = vpop.f32.mrf.mxu0  ;;  %v2810_v43 = vld [vmem:[#allocation8 + $0x2c0] sm:$0xf0] }
 0x2e9   :  { %v3207_v45 = vld [vmem:[#allocation8 + $0x2c4] sm:$0xf0] }
 0x2eb   :  { %v1017_v46 = vpop.f32.mrf.mxu2 }
 0x2ec   :  { %v1030_v48 = vpop.f32.mrf.mxu3  ;;  %v1018_v49 = vadd.f32 %v1017_v46, %v1005_v47  ;;  %v2813_v46 = vor.u32 %v3198_v41, %v2810_v43  ;;  %v2817_v47 = vor.u32 %v3207_v45, %v2816_v44  ;;  %v3202_v41 = vld [vmem:[#allocation8 + $0x2a4] sm:$0xf]  ;;  %v2848_v43 = vld [vmem:[#allocation8 + $0x2a8] sm:$0xf] }
 0x2ed   :  { %v3211_v45 = vld [vmem:[#allocation8 + $0x2e4] sm:$0xf0] }
 0x2ee   :  { %v1031_v52 = vadd.f32 %v1030_v48, %v1018_v49  ;;  %v3199_v48 = vld [vmem:[#allocation8 + $0x28c] sm:$0xf]  ;;  %1479 = vmatpush.bf16.msra.mxu3 %v2813_v46  ;;  %1492 = vmatpush.bf16.msrb.mxu0 %v2817_v47 }
 0x2ef   :  { %v1056_v50 = vpop.f32.mrf.mxu1  ;;  %v2818_v49 = vld [vmem:[#allocation8 + $0x2c8] sm:$0xf0] }
 0x2f0   :  { %v1095_v51 = vpop.f32.mrf.mxu0  ;;  %v1044_v55 = vadd.f32 %v1043_v39, %v1031_v52  ;;  %v2808_v39 = vld [vmem:[#allocation8 + $0x280] sm:$0xf]  ;;  %v3203_v46 = vld [vmem:[#allocation8 + $0x2ac] sm:$0xf] }
 0x2f1   :  { %v2809_v42 = vor.u32 %v3206_v40, %v2808_v39  ;;  %v3190_v52 = vld [vmem:[#allocation8 + $0x23c] sm:$0xf0]  ;;  %v2850_v47 = vld [vmem:[#allocation8 + $0x2e8] sm:$0xf0] }
 0x2f2   :  { %v1057_v59 = vadd.f32 %v1056_v50, %v1044_v55  ;;  %v2821_v50 = vor.u32 %v3199_v48, %v2818_v49  ;;  %v2746_v55 = vld [vmem:[#allocation8 + $0x240] sm:$0xf0]  ;;  %v2840_v39 = vld [vmem:[#allocation8 + $0x2a0] sm:$0xf] }
 0x2f3   :  { %v1019_v53 = vpop.f32.mrf.mxu2  ;;  %1466 = vmatpush.bf16.msra.mxu2 %v2809_v42  ;;  %v3210_v40 = vld [vmem:[#allocation8 + $0x2dc] sm:$0xf0]  ;;  %v2842_v42 = vld [vmem:[#allocation8 + $0x2e0] sm:$0xf0] }
 0x2f4   :  { %v1032_v54 = vpop.f32.mrf.mxu3  ;;  %v3182_v53 = vld [vmem:[#allocation8 + $0x204] sm:$0xf]  ;;  %1505 = vmatpush.bf16.msrb.mxu1 %v2821_v50  ;;  %v2841_v49 = vor.u32 %v3210_v40, %v2840_v39  ;;  %v2845_v50 = vor.u32 %v3202_v41, %v2842_v42  ;;  %v3223_v39 = vld [vmem:[#allocation8 + $0x344] sm:$0xf0]  ;;  %v3215_v40 = vld [vmem:[#allocation8 + $0x30c] sm:$0xf] }
 0x2f5   :  { %v2898_v42 = vld [vmem:[#allocation8 + $0x348] sm:$0xf0] }
 0x2f7   :  { %v1058_v56 = vpop.f32.mrf.mxu1 }
 0x2f8   :  { %v1097_v58 = vpop.f32.mrf.mxu0  ;;  %v2752_v56 = vld [vmem:[#allocation8 + $0x208] sm:$0xf] }
 0x2f9   :  { %v3191_v58 = vld [vmem:[#allocation8 + $0x244] sm:$0xf0] }
 0x2fb   :  { %v1069_v60 = vpop.f32.mrf.mxu2 }
 0x2fc   :  { %v1070_v61 = vadd.f32 %v1069_v60, %v1057_v59  ;;  %v1082_v62 = vpop.f32.mrf.mxu3  ;;  %v2749_v59 = vor.u32 %v3182_v53, %v2746_v55  ;;  %v2753_v60 = vor.u32 %v3191_v58, %v2752_v56  ;;  %v2853_v53 = vor.u32 %v3203_v46, %v2850_v47  ;;  %v2778_v55 = vld [vmem:[#allocation8 + $0x260] sm:$0xf0]  ;;  %v2784_v56 = vld [vmem:[#allocation8 + $0x228] sm:$0xf]  ;;  %v3222_v46 = vld [vmem:[#allocation8 + $0x33c] sm:$0xf0] }
 0x2fd   :  { %v3195_v58 = vld [vmem:[#allocation8 + $0x264] sm:$0xf0]  ;;  %v3214_v47 = vld [vmem:[#allocation8 + $0x304] sm:$0xf] }
 0x2fe   :  { %v1083_v63 = vadd.f32 %v1082_v62, %v1070_v61  ;;  %v3183_v61 = vld [vmem:[#allocation8 + $0x20c] sm:$0xf]  ;;  %1480 = vmatpush.bf16.msra.mxu3 %v2749_v59  ;;  %1493 = vmatpush.bf16.msrb.mxu0 %v2753_v60 }
 0x2ff   :  { %v2754_v62 = vld [vmem:[#allocation8 + $0x248] sm:$0xf0] }
 0x300   :  { %v1096_v0 = vadd.f32 %v1095_v51, %v1083_v63  ;;  %v2744_v51 = vld [vmem:[#allocation8 + $0x200] sm:$0xf]  ;;  %v2757_v63 = vor.u32 %v3183_v61, %v2754_v62  ;;  %v3187_v59 = vld [vmem:[#allocation8 + $0x22c] sm:$0xf] }
 0x301   :  { %v2745_v54 = vor.u32 %v3190_v52, %v2744_v51  ;;  %v2776_v51 = vld [vmem:[#allocation8 + $0x220] sm:$0xf]  ;;  %v2786_v60 = vld [vmem:[#allocation8 + $0x268] sm:$0xf0] }
 0x302   :  { %v1099_v1 = vadd.f32 %v1096_v0, %v3652_v27  ;;  %1506 = vmatpush.bf16.msrb.mxu1 %v2757_v63  ;;  %v3194_v52 = vld [vmem:[#allocation8 + $0x25c] sm:$0xf0]  ;;  %v2785_v63 = vor.u32 %v3195_v58, %v2784_v56  ;;  %v2968_v56 = vld [vmem:[#allocation8 + $0x390] sm:$0xf] }
 0x303   :  { %v1071_v2 = vpop.f32.mrf.mxu2  ;;  %1467 = vmatpush.bf16.msra.mxu2 %v2745_v54  ;;  %v3186_v54 = vld [vmem:[#allocation8 + $0x224] sm:$0xf]  ;;  %v2777_v61 = vor.u32 %v3194_v52, %v2776_v51  ;;  %v2976_v52 = vld [vmem:[#allocation8 + $0x398] sm:$0xf]  ;;  %v3240_v58 = vld [vmem:[#allocation8 + $0x3cc] sm:$0xf0] }
 0x304   :  { %v1084_v3 = vpop.f32.mrf.mxu3  ;;  %v1102_v4 = vsel %vm172_vm0, %v1099_v1, 0.0  ;;  %v3208_v2 = vld [vmem:[#allocation8 + $0x2cc] sm:$0xf0]  ;;  %v2781_v62 = vor.u32 %v3186_v54, %v2778_v55  ;;  %v3233_v54 = vld [vmem:[#allocation8 + $0x39c] sm:$0xf] }
 0x305   :  { %1103 = vadd.xlane.f32.xlu1 %v1102_v4  ;;  %v3200_v3 = vld [vmem:[#allocation8 + $0x294] sm:$0xf] }
 0x378   :  { %v1104_v5 = vpop.xlane.xlu1 %1103 }
 0x379   :  { %v1105_v6 = vmul.f32 %v1104_v5, %v3642_v16 }
 0x37b   :  { %v1106_v7 = vsub.f32 %v1099_v1, %v1105_v6  ;;  %v2824_v1 = vld [vmem:[#allocation8 + $0x290] sm:$0xf]  ;;  %v2826_v6 = vld [vmem:[#allocation8 + $0x2d0] sm:$0xf0] }
 0x37c   :  { %v2825_v5 = vor.u32 %v3208_v2, %v2824_v1  ;;  %v2856_v1 = vld [vmem:[#allocation8 + $0x2b0] sm:$0xf] }
 0x37d   :  { %v1107_v8 = vmul.f32 %v1106_v7, %v1106_v7  ;;  %v3212_v2 = vld [vmem:[#allocation8 + $0x2ec] sm:$0xf0] }
 0x37e   :  { %1518 = vmatpush.bf16.msrb.mxu2 %v2825_v5  ;;  %v2864_v5 = vld [vmem:[#allocation8 + $0x2b8] sm:$0xf] }
 0x37f   :  { %v1108_v57 = vsel %vm172_vm0, %v1107_v8, 0.0  ;;  %v3192_v8 = vld [vmem:[#allocation8 + $0x24c] sm:$0xf0] }
 0x380   :  { %1109 = vadd.xlane.f32.xlu1 %v1108_v57  ;;  %v2829_v57 = vor.u32 %v3200_v3, %v2826_v6  ;;  %v3204_v3 = vld [vmem:[#allocation8 + $0x2b4] sm:$0xf]  ;;  %v3213_v6 = vld [vmem:[#allocation8 + $0x2f4] sm:$0xf0] }
 0x382   :  { %1531 = vmatpush.bf16.msrb.mxu3 %v2829_v57  ;;  %v2857_v57 = vor.u32 %v3212_v2, %v2856_v1  ;;  %v3217_v2 = vld [vmem:[#allocation8 + $0x31c] sm:$0xf] }
 0x3f3   :  { %v1110_v11 = vpop.xlane.xlu1 %1109 }
 0x3f4   :  { %v1111_v27 = vmul.f32 %v1110_v11, %v3642_v16  ;;  %v3201_v11 = vld [vmem:[#allocation8 + $0x29c] sm:$0xf] }
 0x3f6   :  { %v1112_v13 = vadd.f32 1e-05, %v1111_v27 }
 0x3f8   :  { %3308 = vrsqrt.f32 %v1112_v13  ;;  %vm1119_vm6 = vweird.f32 %v1112_v13 }
 0x3fe   :  { %v3309_v14 = vpop.eup %3308 }
 0x3ff   :  { %v1114_v15 = vmul.f32 %v3309_v14, %v1112_v13  ;;  %vm1120_vm5 = vweird.f32 %v3309_v14 }
 0x400   :  { %vm1121_vm7 = vmor %vm1119_vm6, %vm1120_vm5 }
 0x401   :  { %v1115_v17 = vmul.f32 %v3309_v14, %v1114_v15  ;;  %v2834_v15 = vld [vmem:[#allocation8 + $0x2d8] sm:$0xf0] }
 0x403   :  { %v1116_v12 = vmul.f32 0.5, %v1115_v17  ;;  %v3184_v17 = vld [vmem:[#allocation8 + $0x214] sm:$0xf] }
 0x405   :  { %v1117_v18 = vsub.f32 1.5, %v1116_v12  ;;  %v2837_v12 = vor.u32 %v3201_v11, %v2834_v15  ;;  %v3196_v11 = vld [vmem:[#allocation8 + $0x26c] sm:$0xf0]  ;;  %v2794_v15 = vld [vmem:[#allocation8 + $0x270] sm:$0xf0] }
 0x407   :  { %v1118_v20 = vmul.f32 %v3309_v14, %v1117_v18  ;;  %v2762_v18 = vld [vmem:[#allocation8 + $0x250] sm:$0xf0] }
 0x409   :  { %v1122_v22 = vsel %vm1121_vm7, %v3309_v14, %v1118_v20  ;;  %v2833_v14 = vor.u32 %v3209_v10, %v2832_v9  ;;  %v2768_v20 = vld [vmem:[#allocation8 + $0x218] sm:$0xf]  ;;  %v2792_v10 = vld [vmem:[#allocation8 + $0x230] sm:$0xf] }
 0x40a   :  { %v1123_v24 = vmul.f32 %v1122_v22, %v1106_v7  ;;  %v2760_v7 = vld [vmem:[#allocation8 + $0x210] sm:$0xf]  ;;  %v2765_v22 = vor.u32 %v3184_v17, %v2762_v18  ;;  %v2800_v17 = vld [vmem:[#allocation8 + $0x238] sm:$0xf]  ;;  %v3189_v18 = vld [vmem:[#allocation8 + $0x23c] sm:$0xf] }
 0x40b   :  { %v2761_v13 = vor.u32 %v3192_v8, %v2760_v7  ;;  %1544 = vmatpush.bf16.msra.mxu0 %v2833_v14  ;;  %v3205_v7 = vld [vmem:[#allocation8 + $0x2bc] sm:$0xf]  ;;  %v3188_v14 = vld [vmem:[#allocation8 + $0x234] sm:$0xf] }
 0x40c   :  { %v1125_v25 = vmul.f32 %v3294_v21, %v1123_v24  ;;  %v3193_v21 = vld [vmem:[#allocation8 + $0x254] sm:$0xf0]  ;;  %v3185_v24 = vld [vmem:[#allocation8 + $0x21c] sm:$0xf]  ;;  %1532 = vmatpush.bf16.msrb.mxu3 %v2765_v22  ;;  %v2797_v22 = vor.u32 %v3188_v14, %v2794_v15  ;;  %v2992_v15 = vld [vmem:[#allocation8 + $0x3a8] sm:$0xf] }
 0x40d   :  { %1519 = vmatpush.bf16.msrb.mxu2 %v2761_v13  ;;  %v2866_v8 = vld [vmem:[#allocation8 + $0x2f8] sm:$0xf0] }
 0x40e   :  { %v1127_v26 = vadd.f32 %v3295_v23, %v1125_v25  ;;  %v2769_v23 = vor.u32 %v3193_v21, %v2768_v20  ;;  %v2770_v25 = vld [vmem:[#allocation8 + $0x258] sm:$0xf0]  ;;  %v2869_v13 = vor.u32 %v3205_v7, %v2866_v8  ;;  %v2793_v21 = vor.u32 %v3196_v11, %v2792_v10  ;;  %v3216_v7 = vld [vmem:[#allocation8 + $0x314] sm:$0xf] }
 0x40f   :  { %v2802_v20 = vld [vmem:[#allocation8 + $0x278] sm:$0xf0]  ;;  %v3763_v10 = vld [vmem:[#allocation10 + $0x10] sm:$0xff] }
 0x410   :  { %v1128_v28 = vpack.c.bf16 %v1127_v26, %v1127_v26  ;;  %1545 = vmatpush.bf16.msra.mxu0 %v2769_v23  ;;  %v1267_v11 = vperm.slane %v3763_v10, 2 }
 0x412   :  { %2741 = vmatmul.msk.bf16.vlgmr.msra.gmra.mxu1 %vm172_vm0, %v1128_v28 }
 0x413   :  { %1557 = vmatpush.bf16.msra.mxu1 %v2837_v12  ;;  %v3197_v12 = vld [vmem:[#allocation8 + $0x274] sm:$0xf0] }
 0x414   :  { %v2801_v23 = vor.u32 %v3197_v12, %v2800_v17 }
 0x48f   :  { %v1161_v30 = vpop.f32.mrf.mxu1 }
 0x490   :  { %v1162_v32 = vadd.f32 %v3296_v29, %v1161_v30 }
 0x492   :  { %v1165_v33 = vadd.f32 %v1162_v32, %v1127_v26  ;;  %v2773_v26 = vor.u32 %v3185_v24, %v2770_v25  ;;  %v2805_v24 = vor.u32 %v3189_v18, %v2802_v20  ;;  %v2960_v25 = vld [vmem:[#allocation8 + $0x388] sm:$0xf]  ;;  %v3235_v20 = vld [vmem:[#allocation8 + $0x3ac] sm:$0xf] }
 0x493   :  { %v3243_v18 = vld [vmem:[#allocation8 + $0x3e4] sm:$0xf0] }
 0x494   :  { %v1168_v34 = vsel %vm172_vm0, %v1165_v33, 0.0  ;;  %1558 = vmatpush.bf16.msra.mxu1 %v2773_v26  ;;  %v3239_v26 = vld [vmem:[#allocation8 + $0x3c4] sm:$0xf0] }
 0x495   :  { %1169 = vadd.xlane.f32.xlu2 %v1168_v34 }
 0x497   :  { %v1163_v35 = vpop.f32.mrf.mxu1 }
 0x498   :  { %v3297_v35 = vld [vmem:[#allocation7 + $0x9] ss:$0 sm:$0xff] }
 0x508   :  { %v1170_v19 = vpop.xlane.xlu2 %1169 }
 0x509   :  { %v1171_v36 = vmul.f32 %v1170_v19, %v3642_v16 }
 0x50b   :  { %v3718_v37 = vsub.f32 %v1165_v33, %v1171_v36  ;;  %v3298_v36 = vld [vmem:[#allocation7 + $0xa] ss:$0 sm:$0xff] }
 0x50d   :  { %v1173_v31 = vmul.f32 %v3718_v37, %v3718_v37 }
 0x50f   :  { %v1174_v38 = vsel %vm172_vm0, %v1173_v31, 0.0 }
 0x510   :  { %1175 = vadd.xlane.f32.xlu2 %v1174_v38 }
 0x583   :  { %v1176_v0 = vpop.xlane.xlu2 %1175 }
 0x584   :  { %v1177_v4 = vmul.f32 %v1176_v0, %v3642_v16  ;;  %v2789_v0 = vor.u32 %v3187_v59, %v2786_v60  ;;  %v3232_v59 = vld [vmem:[#allocation8 + $0x394] sm:$0xf]  ;;  %v2969_v60 = vor.u32 %v3240_v58, %v2968_v56  ;;  %v1272_v56 = vperm.slane %v3763_v10, 7  ;;  %v2920_v58 = vld [vmem:[#allocation8 + $0x320] sm:$0xf] }
 0x586   :  { %v1178_v27 = vadd.f32 1e-05, %v1177_v4  ;;  %v2858_v4 = vld [vmem:[#allocation8 + $0x2f0] sm:$0xf0] }
 0x587   :  { %v2861_v9 = vor.u32 %v3204_v3, %v2858_v4  ;;  %v2914_v3 = vld [vmem:[#allocation8 + $0x358] sm:$0xf0] }
 0x588   :  { %3310 = vrsqrt.f32 %v1178_v27  ;;  %vm1185_vm9 = vweird.f32 %v1178_v27  ;;  %v2917_v4 = vor.u32 %v3217_v2, %v2914_v3 }
 0x58e   :  { %v3311_v28 = vpop.eup %3310 }
 0x58f   :  { %v1180_v29 = vmul.f32 %v3311_v28, %v1178_v27  ;;  %vm1186_vm8 = vweird.f32 %v3311_v28  ;;  %v2865_v27 = vor.u32 %v3213_v6, %v2864_v5  ;;  %v2904_v5 = vld [vmem:[#allocation8 + $0x310] sm:$0xf] }
 0x590   :  { %vm1187_vm10 = vmor %vm1185_vm9, %vm1186_vm8  ;;  %v3224_v6 = vld [vmem:[#allocation8 + $0x34c] sm:$0xf0] }
 0x591   :  { %v1181_v30 = vmul.f32 %v3311_v28, %v1180_v29  ;;  %v2962_v29 = vld [vmem:[#allocation8 + $0x3c8] sm:$0xf0]  ;;  %v2905_v8 = vor.u32 %v3224_v6, %v2904_v5  ;;  %v3245_v5 = vld [vmem:[#allocation8 + $0x3f4] sm:$0xf0]  ;;  %v3237_v6 = vld [vmem:[#allocation8 + $0x3bc] sm:$0xf] }
 0x593   :  { %v1182_v32 = vmul.f32 0.5, %v1181_v30  ;;  %v2952_v30 = vld [vmem:[#allocation8 + $0x380] sm:$0xf] }
 0x595   :  { %v1183_v33 = vsub.f32 1.5, %v1182_v32  ;;  %v3238_v32 = vld [vmem:[#allocation8 + $0x3bc] sm:$0xf0] }
 0x597   :  { %v1184_v34 = vmul.f32 %v3311_v28, %v1183_v33  ;;  %v3230_v33 = vld [vmem:[#allocation8 + $0x384] sm:$0xf] }
 0x599   :  { %v1188_v19 = vsel %vm1187_vm10, %v3311_v28, %v1184_v34  ;;  %v3231_v28 = vld [vmem:[#allocation8 + $0x38c] sm:$0xf]  ;;  %v2954_v34 = vld [vmem:[#allocation8 + $0x3c0] sm:$0xf0] }
 0x59a   :  { %v1189_v31 = vmul.f32 %v1188_v19, %v3718_v37  ;;  %v2849_v37 = vor.u32 %v3211_v45, %v2848_v43  ;;  %v2965_v19 = vor.u32 %v3231_v28, %v2962_v29  ;;  %v2901_v43 = vor.u32 %v3215_v40, %v2898_v42  ;;  %v2888_v45 = vld [vmem:[#allocation8 + $0x300] sm:$0xf] }
 0x59c   :  { %v1191_v38 = vmul.f32 %v3297_v35, %v1189_v31  ;;  %v2961_v35 = vor.u32 %v3239_v26, %v2960_v25  ;;  %v2957_v31 = vor.u32 %v3230_v33, %v2954_v34  ;;  %v2993_v26 = vor.u32 %v3243_v18, %v2992_v15  ;;  %v2984_v34 = vld [vmem:[#allocation8 + $0x3a0] sm:$0xf]  ;;  %v3000_v18 = vld [vmem:[#allocation8 + $0x3b0] sm:$0xf] }
 0x59e   :  { %v3725_v44 = vadd.f32 %v3298_v36, %v1191_v38  ;;  %v2953_v36 = vor.u32 %v3238_v32, %v2952_v30  ;;  %v2896_v38 = vld [vmem:[#allocation8 + $0x308] sm:$0xf] }
 0x59f   :  { %v2897_v41 = vor.u32 %v3223_v39, %v2896_v38  ;;  %v2986_v38 = vld [vmem:[#allocation8 + $0x3e0] sm:$0xf0] }
 0x5a0   :  { %v3729_v48 = vpack.c.bf16 %v3725_v44, %v3725_v44 }
 0x5a2   :  { %2870 = vmatmul.msk.bf16.vlgmr.msra.gmra.mxu2 %vm172_vm0, %v3729_v48  ;;  %2871 = vmatmul.msk.bf16.vlgmr.msra.gmra.mxu3 %vm172_vm0, %v3729_v48 }
 0x5a3   :  { %2872 = vmatmul.msk.bf16.vlgmr.msrb.gmra.mxu0 %vm172_vm0, %v3729_v48  ;;  %2873 = vmatmul.msk.bf16.vlgmr.msrb.gmra.mxu1 %vm172_vm0, %v3729_v48 }
 0x5a4   :  { %1570 = vmatpush.bf16.msra.mxu2 %v2841_v49  ;;  %1583 = vmatpush.bf16.msra.mxu3 %v2845_v50  ;;  %v2889_v49 = vor.u32 %v3222_v46, %v2888_v45  ;;  %v2890_v50 = vld [vmem:[#allocation8 + $0x340] sm:$0xf0] }
 0x5a5   :  { %1596 = vmatpush.bf16.msrb.mxu0 %v2849_v37  ;;  %1609 = vmatpush.bf16.msrb.mxu1 %v2853_v53  ;;  %v2893_v51 = vor.u32 %v3214_v47, %v2890_v50  ;;  %v3241_v37 = vld [vmem:[#allocation8 + $0x3d4] sm:$0xf0]  ;;  %v3227_v47 = vld [vmem:[#allocation8 + $0x364] sm:$0xf0]  ;;  %v2930_v50 = vld [vmem:[#allocation8 + $0x368] sm:$0xf0] }
 0x5a6   :  { %v2977_v53 = vor.u32 %v3241_v37, %v2976_v52 }
 0x5a8   :  { %1571 = vmatpush.bf16.msra.mxu2 %v2777_v61  ;;  %1584 = vmatpush.bf16.msra.mxu3 %v2781_v62  ;;  %v2970_v61 = vld [vmem:[#allocation8 + $0x3d0] sm:$0xf0] }
 0x5a9   :  { %1597 = vmatpush.bf16.msrb.mxu0 %v2785_v63  ;;  %1610 = vmatpush.bf16.msrb.mxu1 %v2789_v0  ;;  %v2973_v62 = vor.u32 %v3232_v59, %v2970_v61  ;;  %v2912_v63 = vld [vmem:[#allocation8 + $0x318] sm:$0xf]  ;;  %v3226_v59 = vld [vmem:[#allocation8 + $0x35c] sm:$0xf0]  ;;  %v2922_v61 = vld [vmem:[#allocation8 + $0x360] sm:$0xf0] }
 0x5aa   :  { %v3225_v0 = vld [vmem:[#allocation8 + $0x354] sm:$0xf0]  ;;  %v2921_v3 = vor.u32 %v3226_v59, %v2920_v58 }
 0x5ab   :  { %v2913_v1 = vor.u32 %v3225_v0, %v2912_v63  ;;  %v3008_v0 = vld [vmem:[#allocation8 + $0x3b8] sm:$0xf] }
 0x5b2   :  { %2874 = vmatmul.msk.bf16.vlgmr.msrb.gmra.mxu2 %vm172_vm0, %v3729_v48  ;;  %2875 = vmatmul.msk.bf16.vlgmr.msrb.gmra.mxu3 %vm172_vm0, %v3729_v48 }
 0x5b3   :  { %2876 = vmatmul.msk.bf16.vlgmr.msra.gmra.mxu0 %vm172_vm0, %v3729_v48  ;;  %2877 = vmatmul.msk.bf16.vlgmr.msra.gmra.mxu1 %vm172_vm0, %v3729_v48 }
 0x5b4   :  { %1622 = vmatpush.bf16.msrb.mxu2 %v2857_v57  ;;  %1635 = vmatpush.bf16.msrb.mxu3 %v2861_v9  ;;  %v2906_v57 = vld [vmem:[#allocation8 + $0x350] sm:$0xf0] }
 0x5b5   :  { %1648 = vmatpush.bf16.msra.mxu0 %v2865_v27  ;;  %1661 = vmatpush.bf16.msra.mxu1 %v2869_v13  ;;  %v2909_v9 = vor.u32 %v3216_v7, %v2906_v57  ;;  %v1268_v27 = vperm.slane %v3763_v10, 3  ;;  %v3010_v7 = vld [vmem:[#allocation8 + $0x3f8] sm:$0xf0]  ;;  %v1270_v57 = vperm.slane %v3763_v10, 5 }
 0x5b8   :  { %1623 = vmatpush.bf16.msrb.mxu2 %v2793_v21  ;;  %1636 = vmatpush.bf16.msrb.mxu3 %v2797_v22  ;;  %v2994_v21 = vld [vmem:[#allocation8 + $0x3e8] sm:$0xf0]  ;;  %v1265_v22 = vperm.slane %v3763_v10, 0 }
 0x5b9   :  { %1649 = vmatpush.bf16.msra.mxu0 %v2801_v23  ;;  %1662 = vmatpush.bf16.msra.mxu1 %v2805_v24  ;;  %v1266_v23 = vperm.slane %v3763_v10, 1  ;;  %v2997_v28 = vor.u32 %v3235_v20, %v2994_v21 }
 0x5c2   :  { %2878 = vmatmul.msk.bf16.vlgmr.msra.gmra.mxu2 %vm172_vm0, %v3729_v48  ;;  %2879 = vmatmul.msk.bf16.vlgmr.msra.gmra.mxu3 %vm172_vm0, %v3729_v48 }
 0x5c3   :  { %2880 = vmatmul.msk.bf16.vlgmr.msrb.gmra.mxu0 %vm172_vm0, %v3729_v48  ;;  %2881 = vmatmul.msk.bf16.vlgmr.msrb.gmra.mxu1 %vm172_vm0, %v3729_v48 }
 0x5c4   :  { %1894 = vmatpush.bf16.xpose.msrb.mxu0 %v2961_v35  ;;  %1907 = vmatpush.bf16.xpose.msrb.mxu1 %v2965_v19 }
 0x5c5   :  { %1868 = vmatpush.bf16.xpose.msra.mxu2 %v2953_v36  ;;  %1881 = vmatpush.bf16.xpose.msra.mxu3 %v2957_v31  ;;  %v3242_v36 = vld [vmem:[#allocation8 + $0x3dc] sm:$0xf0]  ;;  %v3234_v31 = vld [vmem:[#allocation8 + $0x3a4] sm:$0xf] }
 0x5c6   :  { %v2985_v45 = vor.u32 %v3242_v36, %v2984_v34  ;;  %v2989_v46 = vor.u32 %v3234_v31, %v2986_v38  ;;  %v3221_v34 = vld [vmem:[#allocation8 + $0x33c] sm:$0xf] }
 0x5c7   :  { %v3773_v31 = vld [vmem:[#allocation10 + $0x18] sm:$0xff] }
 0x5cc   :  { %1895 = vmatpush.bf16.xpose.msrb.mxu0 %v2897_v41  ;;  %1908 = vmatpush.bf16.xpose.msrb.mxu1 %v2901_v43  ;;  %v2928_v43 = vld [vmem:[#allocation8 + $0x328] sm:$0xf] }
 0x5cd   :  { %1869 = vmatpush.bf16.xpose.msra.mxu2 %v2889_v49  ;;  %1882 = vmatpush.bf16.xpose.msra.mxu3 %v2893_v51  ;;  %v3219_v49 = vld [vmem:[#allocation8 + $0x32c] sm:$0xf]  ;;  %v2929_v37 = vor.u32 %v3227_v47, %v2928_v43  ;;  %v1276_v43 = vperm.slane %v3773_v31, 3  ;;  %v3220_v47 = vld [vmem:[#allocation8 + $0x334] sm:$0xf] }
 0x5d2   :  { %2882 = vmatmul.msk.bf16.vlgmr.msrb.gmra.mxu2 %vm172_vm0, %v3729_v48  ;;  %2883 = vmatmul.msk.bf16.vlgmr.msrb.gmra.mxu3 %vm172_vm0, %v3729_v48 }
 0x5d3   :  { %2884 = vmatmul.msk.bf16.vlgmr.msra.gmra.mxu0 %vm172_vm0, %v3729_v48  ;;  %2885 = vmatmul.msk.bf16.vlgmr.msra.gmra.mxu1 %vm172_vm0, %v3729_v48  ;;  %v2978_v48 = vld [vmem:[#allocation8 + $0x3d8] sm:$0xf0] }
 0x5d4   :  { %v2981_v55 = vor.u32 %v3233_v54, %v2978_v48  ;;  %1946 = vmatpush.bf16.xpose.msra.mxu0 %v2977_v53  ;;  %v2933_v53 = vor.u32 %v3219_v49, %v2930_v50  ;;  %v2938_v49 = vld [vmem:[#allocation8 + $0x370] sm:$0xf0] }
 0x5d5   :  { %1920 = vmatpush.bf16.xpose.msrb.mxu2 %v2969_v60  ;;  %1933 = vmatpush.bf16.xpose.msrb.mxu3 %v2973_v62  ;;  %v3218_v60 = vld [vmem:[#allocation8 + $0x324] sm:$0xf] }
 0x5d6   :  { %1959 = vmatpush.bf16.xpose.msra.mxu1 %v2981_v55  ;;  %v1271_v55 = vperm.slane %v3763_v10, 6 }
 0x5dc   :  { %1947 = vmatpush.bf16.xpose.msra.mxu0 %v2913_v1 }
 0x5dd   :  { %1921 = vmatpush.bf16.xpose.msrb.mxu2 %v2905_v8  ;;  %1934 = vmatpush.bf16.xpose.msrb.mxu3 %v2909_v9  ;;  %v1269_v8 = vperm.slane %v3763_v10, 4 }
 0x5de   :  { %1960 = vmatpush.bf16.xpose.msra.mxu1 %v2917_v4  ;;  %v2925_v4 = vor.u32 %v3218_v60, %v2922_v61 }
 0x620   :  { %v1495_v13 = vpop.f32.mrf.mxu0  ;;  %v1508_v14 = vpop.f32.mrf.mxu1 }
 0x621   :  { %v1496_v17 = vadd.f32 %v1495_v13, %v1267_v11  ;;  %v1509_v12 = vadd.f32 %v1508_v14, %v1268_v27  ;;  %v3009_v27 = vor.u32 %v3245_v5, %v3008_v0  ;;  %v3013_v13 = vor.u32 %v3237_v6, %v3010_v7 }
 0x623   :  { %v1670_v24 = vmax.f32 %v1496_v17, 0.0  ;;  %v1671_v25 = vmax.f32 %v1509_v12, 0.0 }
 0x625   :  { %v1686_v29 = vpack.c.bf16 %v1670_v24, %v1670_v24  ;;  %v1687_v30 = vpack.c.bf16 %v1671_v25, %v1671_v25  ;;  %v1469_v32 = vpop.f32.mrf.mxu2  ;;  %v1482_v33 = vpop.f32.mrf.mxu3  ;;  %v3002_v24 = vld [vmem:[#allocation8 + $0x3f0] sm:$0xf0] }
 0x626   :  { %v1470_v35 = vadd.f32 %v1469_v32, %v1265_v22  ;;  %v1483_v19 = vadd.f32 %v1482_v33, %v1266_v23  ;;  %v3244_v22 = vld [vmem:[#allocation8 + $0x3ec] sm:$0xf0]  ;;  %v3236_v23 = vld [vmem:[#allocation8 + $0x3b4] sm:$0xf]  ;;  %v3229_v33 = vld [vmem:[#allocation8 + $0x374] sm:$0xf0] }
 0x627   :  { %1896 = vmatmul.bf16.vlgmr.msrb.gmra.mxu0 %v1686_v29  ;;  %1909 = vmatmul.bf16.vlgmr.msrb.gmra.mxu1 %v1687_v30  ;;  %v2944_v29 = vld [vmem:[#allocation8 + $0x338] sm:$0xf]  ;;  %v3001_v30 = vor.u32 %v3244_v22, %v3000_v18  ;;  %v3005_v32 = vor.u32 %v3236_v23, %v3002_v24 }
 0x628   :  { %v1668_v39 = vmax.f32 %v1470_v35, 0.0  ;;  %v1669_v40 = vmax.f32 %v1483_v19, 0.0  ;;  %v1497_v41 = vpop.f32.mrf.mxu0  ;;  %v1510_v42 = vpop.f32.mrf.mxu1  ;;  %1998 = vmatpush.bf16.xpose.msrb.mxu0 %v2993_v26  ;;  %2011 = vmatpush.bf16.xpose.msrb.mxu1 %v2997_v28  ;;  %v2946_v35 = vld [vmem:[#allocation8 + $0x378] sm:$0xf0]  ;;  %v2945_v38 = vor.u32 %v3229_v33, %v2944_v29 }
 0x629   :  { %v1275_v42 = vperm.slane %v3773_v31, 2 }
 0x62a   :  { %v1684_v51 = vpack.c.bf16 %v1668_v39, %v1668_v39  ;;  %v1685_v52 = vpack.c.bf16 %v1669_v40, %v1669_v40  ;;  %v2949_v39 = vor.u32 %v3221_v34, %v2946_v35 }
 0x62c   :  { %1870 = vmatmul.bf16.vlgmr.msra.gmra.mxu2 %v1684_v51  ;;  %1883 = vmatmul.bf16.vlgmr.msra.gmra.mxu3 %v1685_v52 }
 0x62d   :  { %v1471_v54 = vpop.f32.mrf.mxu2  ;;  %v1484_v48 = vpop.f32.mrf.mxu3  ;;  %1972 = vmatpush.bf16.xpose.msra.mxu2 %v2985_v45  ;;  %1985 = vmatpush.bf16.xpose.msra.mxu3 %v2989_v46  ;;  %v2936_v45 = vld [vmem:[#allocation8 + $0x330] sm:$0xf] }
 0x62e   :  { %v3228_v46 = vld [vmem:[#allocation8 + $0x36c] sm:$0xf0]  ;;  %v2941_v54 = vor.u32 %v3220_v47, %v2938_v49  ;;  %v1273_v48 = vperm.slane %v3773_v31, 0 }
 0x630   :  { %v1547_v62 = vpop.f32.mrf.mxu0  ;;  %v1560_v63 = vpop.f32.mrf.mxu1  ;;  %1999 = vmatpush.bf16.xpose.msrb.mxu0 %v2929_v37  ;;  %2012 = vmatpush.bf16.xpose.msrb.mxu1 %v2933_v53  ;;  %v2937_v53 = vor.u32 %v3228_v46, %v2936_v45 }
 0x631   :  { %v1548_v1 = vadd.f32 %v1547_v62, %v1271_v55  ;;  %v1561_v2 = vadd.f32 %v1560_v63, %v1272_v56  ;;  %v1274_v55 = vperm.slane %v3773_v31, 1 }
 0x633   :  { %v1674_v9 = vmax.f32 %v1548_v1, 0.0  ;;  %v1675_v11 = vmax.f32 %v1561_v2, 0.0 }
 0x635   :  { %v1690_v14 = vpack.c.bf16 %v1674_v9, %v1674_v9  ;;  %v1691_v15 = vpack.c.bf16 %v1675_v11, %v1675_v11  ;;  %v1521_v17 = vpop.f32.mrf.mxu2  ;;  %v1534_v12 = vpop.f32.mrf.mxu3  ;;  %1973 = vmatpush.bf16.xpose.msra.mxu2 %v2921_v3  ;;  %1986 = vmatpush.bf16.xpose.msra.mxu3 %v2925_v4  ;;  %v1280_v9 = vperm.slane %v3773_v31, 7 }
 0x636   :  { %v1522_v20 = vadd.f32 %v1521_v17, %v1269_v8  ;;  %v1535_v21 = vadd.f32 %v1534_v12, %v1270_v57  ;;  %v1279_v57 = vperm.slane %v3773_v31, 6  ;;  %v1278_v17 = vperm.slane %v3773_v31, 5 }
 0x637   :  { %1948 = vmatmul.bf16.vlgmr.msra.gmra.mxu0 %v1690_v14  ;;  %1961 = vmatmul.bf16.vlgmr.msra.gmra.mxu1 %v1691_v15  ;;  %v1277_v15 = vperm.slane %v3773_v31, 4 }
 0x638   :  { %v1672_v25 = vmax.f32 %v1522_v20, 0.0  ;;  %v1673_v10 = vmax.f32 %v1535_v21, 0.0  ;;  %v1549_v26 = vpop.f32.mrf.mxu0  ;;  %v1562_v28 = vpop.f32.mrf.mxu1  ;;  %2050 = vmatpush.bf16.xpose.msra.mxu0 %v3009_v27  ;;  %2063 = vmatpush.bf16.xpose.msra.mxu1 %v3013_v13 }
 0x63a   :  { %v1688_v19 = vpack.c.bf16 %v1672_v25, %v1672_v25  ;;  %v1689_v36 = vpack.c.bf16 %v1673_v10, %v1673_v10 }
 0x63c   :  { %1922 = vmatmul.bf16.vlgmr.msrb.gmra.mxu2 %v1688_v19  ;;  %1935 = vmatmul.bf16.vlgmr.msrb.gmra.mxu3 %v1689_v36 }
 0x63d   :  { %v1523_v40 = vpop.f32.mrf.mxu2  ;;  %v1536_v41 = vpop.f32.mrf.mxu3  ;;  %2024 = vmatpush.bf16.xpose.msrb.mxu2 %v3001_v30  ;;  %2037 = vmatpush.bf16.xpose.msrb.mxu3 %v3005_v32 }
 0x63e   :  { %v3299_v40 = vld [vmem:[#allocation7 + $0xb] ss:$0 sm:$0xff] }
 0x640   :  { %v1599_v50 = vpop.f32.mrf.mxu0  ;;  %v1612_v51 = vpop.f32.mrf.mxu1  ;;  %2051 = vmatpush.bf16.xpose.msra.mxu0 %v2945_v38  ;;  %2064 = vmatpush.bf16.xpose.msra.mxu1 %v2949_v39 }
 0x641   :  { %v1600_v52 = vadd.f32 %v1599_v50, %v1275_v42  ;;  %v1613_v37 = vadd.f32 %v1612_v51, %v1276_v43 }
 0x643   :  { %v1678_v56 = vmax.f32 %v1600_v52, 0.0  ;;  %v1679_v58 = vmax.f32 %v1613_v37, 0.0 }
 0x645   :  { %v1694_v59 = vpack.c.bf16 %v1678_v56, %v1678_v56  ;;  %v1695_v60 = vpack.c.bf16 %v1679_v58, %v1679_v58  ;;  %v1573_v61 = vpop.f32.mrf.mxu2  ;;  %v1586_v62 = vpop.f32.mrf.mxu3  ;;  %2025 = vmatpush.bf16.xpose.msrb.mxu2 %v2937_v53  ;;  %2038 = vmatpush.bf16.xpose.msrb.mxu3 %v2941_v54 }
 0x646   :  { %v1574_v63 = vadd.f32 %v1573_v61, %v1273_v48  ;;  %v1587_v0 = vadd.f32 %v1586_v62, %v1274_v55 }
 0x647   :  { %2000 = vmatmul.bf16.vlgmr.msrb.gmra.mxu0 %v1694_v59  ;;  %2013 = vmatmul.bf16.vlgmr.msrb.gmra.mxu1 %v1695_v60 }
 0x648   :  { %v1676_v1 = vmax.f32 %v1574_v63, 0.0  ;;  %v1677_v2 = vmax.f32 %v1587_v0, 0.0  ;;  %v1601_v3 = vpop.f32.mrf.mxu0  ;;  %v1614_v4 = vpop.f32.mrf.mxu1 }
 0x64a   :  { %v1692_v5 = vpack.c.bf16 %v1676_v1, %v1676_v1  ;;  %v1693_v6 = vpack.c.bf16 %v1677_v2, %v1677_v2 }
 0x64c   :  { %1974 = vmatmul.bf16.vlgmr.msra.gmra.mxu2 %v1692_v5  ;;  %1987 = vmatmul.bf16.vlgmr.msra.gmra.mxu3 %v1693_v6 }
 0x64d   :  { %v1575_v7 = vpop.f32.mrf.mxu2  ;;  %v1588_v8 = vpop.f32.mrf.mxu3 }
 0x650   :  { %v1651_v11 = vpop.f32.mrf.mxu0  ;;  %v1664_v27 = vpop.f32.mrf.mxu1 }
 0x651   :  { %v1652_v13 = vadd.f32 %v1651_v11, %v1279_v57  ;;  %v1665_v14 = vadd.f32 %v1664_v27, %v1280_v9 }
 0x653   :  { %v1682_v12 = vmax.f32 %v1652_v13, 0.0  ;;  %v1683_v18 = vmax.f32 %v1665_v14, 0.0 }
 0x655   :  { %v1698_v20 = vpack.c.bf16 %v1682_v12, %v1682_v12  ;;  %v1699_v21 = vpack.c.bf16 %v1683_v18, %v1683_v18  ;;  %v1625_v22 = vpop.f32.mrf.mxu2  ;;  %v1638_v23 = vpop.f32.mrf.mxu3 }
 0x656   :  { %v1626_v24 = vadd.f32 %v1625_v22, %v1277_v15  ;;  %v1639_v25 = vadd.f32 %v1638_v23, %v1278_v17 }
 0x657   :  { %2052 = vmatmul.bf16.vlgmr.msra.gmra.mxu0 %v1698_v20  ;;  %2065 = vmatmul.bf16.vlgmr.msra.gmra.mxu1 %v1699_v21 }
 0x658   :  { %v1680_v10 = vmax.f32 %v1626_v24, 0.0  ;;  %v1681_v26 = vmax.f32 %v1639_v25, 0.0  ;;  %v1653_v28 = vpop.f32.mrf.mxu0  ;;  %v1666_v29 = vpop.f32.mrf.mxu1 }
 0x659   :  { %v3032_v28 = vld [vmem:[#allocation11 + $0x20] sm:$0xf]  ;;  %v3252_v29 = vld [vmem:[#allocation11 + $0x2c] sm:$0xf0] }
 0x65a   :  { %v1696_v30 = vpack.c.bf16 %v1680_v10, %v1680_v10  ;;  %v1697_v32 = vpack.c.bf16 %v1681_v26, %v1681_v26 }
 0x65c   :  { %2026 = vmatmul.bf16.vlgmr.msrb.gmra.mxu2 %v1696_v30  ;;  %2039 = vmatmul.bf16.vlgmr.msrb.gmra.mxu3 %v1697_v32  ;;  %v3250_v30 = vld [vmem:[#allocation11 + $0x24] sm:$0xf]  ;;  %v3033_v32 = vor.u32 %v3252_v29, %v3032_v28 }
 0x65d   :  { %v1627_v33 = vpop.f32.mrf.mxu2  ;;  %v1640_v34 = vpop.f32.mrf.mxu3  ;;  %v2398_v28 = vld [vmem:[#allocation13 + $0x2] ss:$4 sm:$0xf] }
 0x65e   :  { %v3034_v33 = vld [vmem:[#allocation11 + $0x30] sm:$0xf0]  ;;  %v3253_v34 = vld [vmem:[#allocation11 + $0x34] sm:$0xf0]  ;;  %2167 = vmatpush.bf16.msra.mxu2 %v3033_v32 }
 0x6a4   :  { %v1897_v35 = vpop.f32.mrf.mxu0  ;;  %v1910_v19 = vpop.f32.mrf.mxu1 }
 0x6ac   :  { %v1899_v36 = vpop.f32.mrf.mxu0  ;;  %v1912_v31 = vpop.f32.mrf.mxu1 }
 0x6ad   :  { %v3251_v36 = vld [vmem:[#allocation11 + $0x2c] sm:$0xf]  ;;  %v3042_v31 = vld [vmem:[#allocation11 + $0x38] sm:$0xf0] }
 0x6af   :  { %v1871_v38 = vpop.f32.mrf.mxu2  ;;  %v1884_v39 = vpop.f32.mrf.mxu3 }
 0x6b0   :  { %v1872_v43 = vadd.f32 %v3299_v40, %v1871_v38  ;;  %v3045_v38 = vor.u32 %v3251_v36, %v3042_v31  ;;  %v3248_v40 = vld [vmem:[#allocation11 + $0xc] sm:$0xf0]  ;;  %v2402_v36 = vperm.slane %v2398_v28, 2 }
 0x6b2   :  { %v1885_v47 = vadd.f32 %v1884_v39, %v1872_v43  ;;  %v3016_v39 = vld [vmem:[#allocation11] sm:$0xf]  ;;  %2206 = vmatpush.bf16.msrb.mxu1 %v3045_v38  ;;  %v3018_v43 = vld [vmem:[#allocation11 + $0x10] sm:$0xf0] }
 0x6b4   :  { %v1949_v41 = vpop.f32.mrf.mxu0  ;;  %v1962_v42 = vpop.f32.mrf.mxu1  ;;  %v1898_v51 = vadd.f32 %v1897_v35, %v1885_v47  ;;  %v3037_v35 = vor.u32 %v3250_v30, %v3034_v33 }
 0x6b6   :  { %v1911_v53 = vadd.f32 %v1910_v19, %v1898_v51  ;;  %2180 = vmatpush.bf16.msra.mxu3 %v3037_v35  ;;  %v3026_v51 = vld [vmem:[#allocation11 + $0x18] sm:$0xf0]  ;;  %v2401_v35 = vperm.slane %v2398_v28, 1 }
 0x6b7   :  { %v1873_v45 = vpop.f32.mrf.mxu2  ;;  %v1886_v46 = vpop.f32.mrf.mxu3 }
 0x6b8   :  { %v3024_v45 = vld [vmem:[#allocation11 + $0x8] sm:$0xf]  ;;  %v3249_v46 = vld [vmem:[#allocation11 + $0x14] sm:$0xf0] }
 0x6bc   :  { %v1951_v49 = vpop.f32.mrf.mxu0  ;;  %v1964_v50 = vpop.f32.mrf.mxu1 }
 0x6bd   :  { %v3025_v49 = vor.u32 %v3249_v46, %v3024_v45  ;;  %v3247_v50 = vld [vmem:[#allocation11 + $0xc] sm:$0xf] }
 0x6bf   :  { %v1923_v52 = vpop.f32.mrf.mxu2  ;;  %v1936_v37 = vpop.f32.mrf.mxu3 }
 0x6c0   :  { %v1924_v54 = vadd.f32 %v1923_v52, %v1911_v53  ;;  %v3029_v52 = vor.u32 %v3247_v50, %v3026_v51  ;;  %v3261_v53 = vld [vmem:[#allocation14 + $0x38] sm:$0xff] }
 0x6c2   :  { %v1937_v59 = vadd.f32 %v1936_v37, %v1924_v54  ;;  %2207 = vmatpush.bf16.msrb.mxu1 %v3029_v52  ;;  %v3269_v54 = vld [vmem:[#allocation14 + $0x78] sm:$0xff] }
 0x6c4   :  { %v2001_v48 = vpop.f32.mrf.mxu0  ;;  %v2014_v55 = vpop.f32.mrf.mxu1  ;;  %v1950_v60 = vadd.f32 %v1949_v41, %v1937_v59  ;;  %v3246_v41 = vld [vmem:[#allocation11 + $0x4] sm:$0xf]  ;;  %v3259_v59 = vld [vmem:[#allocation14 + $0x28] sm:$0xff] }
 0x6c5   :  { %v3021_v47 = vor.u32 %v3246_v41, %v3018_v43 }
 0x6c6   :  { %v1963_v1 = vadd.f32 %v1962_v42, %v1950_v60  ;;  %v3017_v42 = vor.u32 %v3248_v40, %v3016_v39  ;;  %v3267_v60 = vld [vmem:[#allocation14 + $0x68] sm:$0xff] }
 0x6c7   :  { %v1925_v56 = vpop.f32.mrf.mxu2  ;;  %v1938_v58 = vpop.f32.mrf.mxu3  ;;  %2181 = vmatpush.bf16.msra.mxu3 %v3021_v47 }
 0x6c8   :  { %2168 = vmatpush.bf16.msra.mxu2 %v3017_v42  ;;  %v3268_v56 = vld [vmem:[#allocation14 + $0x70] sm:$0xff]  ;;  %v2403_v42 = vperm.slane %v2398_v28, 3 }
 0x6cb   :  { %2362 = vmatpush.bf16.msrb.mxu3 %v3269_v54 }
 0x6cc   :  { %v2003_v61 = vpop.f32.mrf.mxu0  ;;  %v2016_v62 = vpop.f32.mrf.mxu1  ;;  %2349 = vmatpush.bf16.msrb.mxu2 %v3261_v53 }
 0x6cd   :  { %v3258_v61 = vld [vmem:[#allocation14 + $0x20] sm:$0xff] }
 0x6ce   :  { %v3266_v62 = vld [vmem:[#allocation14 + $0x60] sm:$0xff] }
 0x6cf   :  { %v1975_v63 = vpop.f32.mrf.mxu2  ;;  %v1988_v0 = vpop.f32.mrf.mxu3  ;;  %2363 = vmatpush.bf16.msrb.mxu3 %v3268_v56 }
 0x6d0   :  { %v1976_v2 = vadd.f32 %v1975_v63, %v1963_v1 }
 0x6d2   :  { %v1989_v5 = vadd.f32 %v1988_v0, %v1976_v2  ;;  %v3265_v2 = vld [vmem:[#allocation14 + $0x58] sm:$0xff] }
 0x6d3   :  { %2364 = vmatpush.bf16.msrb.mxu3 %v3267_v60 }
 0x6d4   :  { %v2053_v3 = vpop.f32.mrf.mxu0  ;;  %v2066_v4 = vpop.f32.mrf.mxu1  ;;  %v2002_v8 = vadd.f32 %v2001_v48, %v1989_v5 }
 0x6d6   :  { %v2015_v11 = vadd.f32 %v2014_v55, %v2002_v8  ;;  %v3260_v55 = vld [vmem:[#allocation14 + $0x30] sm:$0xff]  ;;  %v3301_v8 = vld [vmem:[#allocation7 + $0xd] ss:$0 sm:$0xff] }
 0x6d7   :  { %v1977_v6 = vpop.f32.mrf.mxu2  ;;  %v1990_v7 = vpop.f32.mrf.mxu3  ;;  %2350 = vmatpush.bf16.msrb.mxu2 %v3260_v55  ;;  %2365 = vmatpush.bf16.msrb.mxu3 %v3266_v62  ;;  %v3303_v55 = vld [vmem:[#allocation13 + $0x1] ss:$0 sm:$0xff] }
 0x6d8   :  { %v3300_v6 = vld [vmem:[#allocation7 + $0xc] ss:$0 sm:$0xff] }
 0x6db   :  { %2351 = vmatpush.bf16.msrb.mxu2 %v3259_v59  ;;  %2366 = vmatpush.bf16.msrb.mxu3 %v3265_v2 }
 0x6dc   :  { %v2055_v57 = vpop.f32.mrf.mxu0  ;;  %v2068_v9 = vpop.f32.mrf.mxu1 }
 0x6df   :  { %v2027_v27 = vpop.f32.mrf.mxu2  ;;  %v2040_v13 = vpop.f32.mrf.mxu3  ;;  %2352 = vmatpush.bf16.msrb.mxu2 %v3258_v61 }
 0x6e0   :  { %v2028_v14 = vadd.f32 %v2027_v27, %v2015_v11 }
 0x6e2   :  { %v2041_v15 = vadd.f32 %v2040_v13, %v2028_v14  ;;  %v3256_v13 = vld [vmem:[#allocation14 + $0x10] sm:$0xff] }
 0x6e3   :  { %v3264_v14 = vld [vmem:[#allocation14 + $0x50] sm:$0xff] }
 0x6e4   :  { %v2054_v17 = vadd.f32 %v2053_v3, %v2041_v15  ;;  %2367 = vmatpush.bf16.msrb.mxu3 %v3264_v14  ;;  %v3255_v15 = vld [vmem:[#allocation14 + $0x8] sm:$0xff] }
 0x6e6   :  { %v2067_v12 = vadd.f32 %v2066_v4, %v2054_v17  ;;  %v3263_v17 = vld [vmem:[#allocation14 + $0x48] sm:$0xff] }
 0x6e7   :  { %v2029_v18 = vpop.f32.mrf.mxu2  ;;  %v2042_v20 = vpop.f32.mrf.mxu3 }
 0x6e8   :  { %v2070_v21 = vadd.f32 %v2067_v12, %v3725_v44  ;;  %v3040_v44 = vld [vmem:[#allocation11 + $0x28] sm:$0xf]  ;;  %2368 = vmatpush.bf16.msrb.mxu3 %v3263_v17  ;;  %v3254_v12 = vld [vmem:[#allocation14] sm:$0xff] }
 0x6e9   :  { %v3041_v19 = vor.u32 %v3253_v34, %v3040_v44  ;;  %v3262_v18 = vld [vmem:[#allocation14 + $0x40] sm:$0xff]  ;;  %v2108_v20 = vld [vmem:[#allocation13] ss:$4 sm:$0xf]  ;;  %v2400_v44 = vperm.slane %v2398_v28, 0 }
 0x6ea   :  { %v2073_v22 = vsel %vm172_vm0, %v2070_v21, 0.0 }
 0x6eb   :  { %2074 = vadd.xlane.f32.xlu0 %v2073_v22  ;;  %2193 = vmatpush.bf16.msrb.mxu0 %v3041_v19 }
 0x6ec   :  { %2369 = vmatpush.bf16.msrb.mxu3 %v3262_v18 }
 0x6ef   :  { %2194 = vmatpush.bf16.msrb.mxu0 %v3025_v49 }
 0x75e   :  { %v2075_v23 = vpop.xlane.xlu0 %2074 }
 0x75f   :  { %v2076_v24 = vmul.f32 %v2075_v23, %v3642_v16 }
 0x761   :  { %v3786_v25 = vsub.f32 %v2070_v21, %v2076_v24  ;;  %v2112_v21 = vperm.slane %v2108_v20, 2  ;;  %v2113_v24 = vperm.slane %v2108_v20, 3 }
 0x763   :  { %v2078_v10 = vmul.f32 %v3786_v25, %v3786_v25 }
 0x765   :  { %v2079_v26 = vsel %vm172_vm0, %v2078_v10, 0.0  ;;  %v2111_v10 = vperm.slane %v2108_v20, 1 }
 0x766   :  { %2080 = vadd.xlane.f32.xlu1 %v2079_v26 }
 0x7d9   :  { %v2081_v37 = vpop.xlane.xlu1 %2080 }
 0x7da   :  { %v2082_v48 = vmul.f32 %v2081_v37, %v3642_v16  ;;  %v3257_v16 = vld [vmem:[#allocation14 + $0x18] sm:$0xff] }
 0x7db   :  { %2353 = vmatpush.bf16.msrb.mxu2 %v3257_v16 }
 0x7dc   :  { %v2083_v58 = vadd.f32 1e-05, %v2082_v48  ;;  %v3562_v48 = vmov 0  }
 0x7dd   :  { %3288 = vset.pattern.permute.xlu2 %v3562_v48  ;;  %3289 = vset.pattern.permute.xlu0 %v3562_v48 }
 0x7de   :  { %3312 = vrsqrt.f32 %v2083_v58  ;;  %vm2090_vm12 = vweird.f32 %v2083_v58 }
 0x7df   :  { %2354 = vmatpush.bf16.msrb.mxu2 %v3256_v13 }
 0x7e3   :  { %2355 = vmatpush.bf16.msrb.mxu2 %v3255_v15 }
 0x7e4   :  { %v3313_v63 = vpop.eup %3312 }
 0x7e5   :  { %v2085_v0 = vmul.f32 %v3313_v63, %v2083_v58  ;;  %vm2091_vm11 = vweird.f32 %v3313_v63 }
 0x7e6   :  { %vm2092_vm13 = vmor %vm2090_vm12, %vm2091_vm11 }
 0x7e7   :  { %v2086_v1 = vmul.f32 %v3313_v63, %v2085_v0  ;;  %2356 = vmatpush.bf16.msrb.mxu2 %v3254_v12 }
 0x7e9   :  { %v2087_v3 = vmul.f32 0.5, %v2086_v1 }
 0x7eb   :  { %v2088_v4 = vsub.f32 1.5, %v2087_v3  ;;  %v2420_v3 = vlaneseq }
 0x7ed   :  { %v2089_v5 = vmul.f32 %v3313_v63, %v2088_v4  ;;  %vm3797_vm14 = vcmp.lt.s32.totalorder %v2420_v3, 128 }
 0x7ef   :  { %v2093_v7 = vsel %vm2092_vm13, %v3313_v63, %v2089_v5  ;;  %v3302_v63 = vld [vmem:[#allocation13 + $0x3] ss:$0 sm:$0xff] }
 0x7f0   :  { %v2094_v57 = vmul.f32 %v2093_v7, %v3786_v25  ;;  %v2110_v25 = vperm.slane %v2108_v20, 0 }
 0x7f2   :  { %v2096_v9 = vmul.f32 %v3300_v6, %v2094_v57 }
 0x7f4   :  { %v2098_v11 = vadd.f32 %v3301_v8, %v2096_v9 }
 0x7f6   :  { %v2099_v27 = vpack.c.bf16 %v2098_v11, %v2098_v11 }
 0x7f8   :  { %3046 = vmatmul.msk.bf16.vlgmr.msra.gmra.mxu2 %vm172_vm0, %v2099_v27  ;;  %3047 = vmatmul.msk.bf16.vlgmr.msra.gmra.mxu3 %vm172_vm0, %v2099_v27 }
 0x7f9   :  { %3048 = vmatmul.msk.bf16.vlgmr.msrb.gmra.mxu0 %vm172_vm0, %v2099_v27  ;;  %3049 = vmatmul.msk.bf16.vlgmr.msrb.gmra.mxu1 %vm172_vm0, %v2099_v27 }
 0x876   :  { %v2196_v22 = vpop.f32.mrf.mxu0  ;;  %v2209_v23 = vpop.f32.mrf.mxu1 }
 0x877   :  { %v2197_v26 = vadd.f32 %v2196_v22, %v2112_v21  ;;  %v2210_v29 = vadd.f32 %v2209_v23, %v2113_v24 }
 0x879   :  { %v2215_v19 = vmax.f32 %v2197_v26, 0.0  ;;  %v2216_v41 = vmax.f32 %v2210_v29, 0.0 }
 0x87b   :  { %v2170_v30 = vpop.f32.mrf.mxu2  ;;  %v2183_v32 = vpop.f32.mrf.mxu3  ;;  %v2410_v49 = vmul.f32 %v2402_v36, %v2215_v19  ;;  %v2411_v37 = vmul.f32 %v2403_v42, %v2216_v41 }
 0x87c   :  { %v2171_v33 = vadd.f32 %v2170_v30, %v2110_v25  ;;  %v2184_v34 = vadd.f32 %v2183_v32, %v2111_v10 }
 0x87e   :  { %v2213_v31 = vmax.f32 %v2171_v33, 0.0  ;;  %v2214_v38 = vmax.f32 %v2184_v34, 0.0  ;;  %v2198_v39 = vpop.f32.mrf.mxu0  ;;  %v2211_v40 = vpop.f32.mrf.mxu1 }
 0x880   :  { %v2217_v43 = vpack.c.bf16 %v2213_v31, %v2213_v31  ;;  %v2408_v45 = vmul.f32 %v2400_v44, %v2213_v31  ;;  %v2218_v46 = vpack.c.bf16 %v2214_v38, %v2214_v38  ;;  %v2409_v47 = vmul.f32 %v2401_v35, %v2214_v38 }
 0x882   :  { %v2412_v50 = vadd.f32 %v2409_v47, %v2408_v45  ;;  %2357 = vmatmul.bf16.vlgmr.msrb.gmra.mxu2 %v2217_v43  ;;  %2370 = vmatmul.bf16.vlgmr.msrb.gmra.mxu3 %v2218_v46 }
 0x883   :  { %v2172_v51 = vpop.f32.mrf.mxu2  ;;  %v2185_v52 = vpop.f32.mrf.mxu3 }
 0x884   :  { %v2413_v53 = vadd.f32 %v2412_v50, %v2410_v49 }
 0x886   :  { %v2414_v54 = vadd.f32 %v2413_v53, %v2411_v37 }
 0x888   :  { %2415 = vadd.xlane.f32.xlu0 %v2414_v54 }
 0x8fb   :  { %v2416_v0 = vpop.xlane.xlu0 %2415 }
 0x8fc   :  { %v2419_v1 = vadd.f32 %v3302_v63, %v2416_v0 }
 0x905   :  { %v2358_v56 = vpop.f32.mrf.mxu2  ;;  %v2371_v58 = vpop.f32.mrf.mxu3 }
 0x906   :  { %v2359_v59 = vadd.f32 %v3303_v55, %v2358_v56 }
 0x908   :  { %v2372_v60 = vadd.f32 %v2371_v58, %v2359_v59 }
 0x90a   :  { %2375 = vmax.xlane.f32.xlu2 %v2372_v60 }
 0x90d   :  { %v2360_v61 = vpop.f32.mrf.mxu2  ;;  %v2373_v62 = vpop.f32.mrf.mxu3 }
 0x922   :  { %2427 = vperm.xlu2 %3288, %v2419_v1  }
 0x97d   :  { %v2376_v16 = vpop.xlane.xlu2 %2375 }
 0x97e   :  { %v2377_v2 = vsub.f32 %v2372_v60, %v2376_v16 }
 0x980   :  { %v2378_v4 = vmul.f32 1.442695, %v2377_v2 }
 0x982   :  { %3314 = vpow2.f32 %v2378_v4 }
 0x985   :  { %v2428_v6 = vpop.permute.xlu2 %2427 }
 0x986   :  { %2430 = vst.msk [vmem:[#allocation16 + $0x1] sm:$0x1] %vm3797_vm14, %v2428_v6 }
 0x988   :  { %v3315_v7 = vpop.eup %3314 }
 0x989   :  { %2380 = vadd.xlane.f32.xlu1 %v3315_v7 }
 0x9fc   :  { %v2381_v8 = vpop.xlane.xlu1 %2380 }
 0x9fd   :  { %3316 = vrcp.f32 %v2381_v8  ;;  %v2393_v27 = vand.u32 2147483648, %v2381_v8  ;;  %v2391_v14 = vand.u32 2147483647, %v2381_v8  ;;  %vm2387_vm0 = vweird.f32 %v2381_v8 }
 0x9ff   :  { %v2394_v17 = vor.u32 1.1754944e-38, %v2393_v27  ;;  %vm2392_vm2 = vcmp.eq.f32.partialorder %v2391_v14, 8.507059e+37 }
 0xa03   :  { %v3317_v57 = vpop.eup %3316 }
 0xa04   :  { %v2383_v9 = vmul.f32 %v3317_v57, %v2381_v8  ;;  %vm2388_vm15 = vweird.f32 %v3317_v57 }
 0xa05   :  { %vm2389_vm1 = vmor %vm2387_vm0, %vm2388_vm15 }
 0xa06   :  { %v2384_v11 = vsub.f32 1.0, %v2383_v9 }
 0xa08   :  { %v2385_v13 = vmul.f32 %v3317_v57, %v2384_v11 }
 0xa0a   :  { %v2386_v15 = vadd.f32 %v3317_v57, %v2385_v13 }
 0xa0c   :  { %v2390_v12 = vsel %vm2389_vm1, %v3317_v57, %v2386_v15 }
 0xa0d   :  { %v2395_v18 = vsel %vm2392_vm2, %v2394_v17, %v2390_v12 }
 0xa0e   :  { %v2396_v20 = vmul.f32 %v3315_v7, %v2395_v18 }
 0xa10   :  { %2424 = vst.msk [vmem:[#allocation16] sm:$0x1] %vm3797_vm14, %v2396_v20 }
 0xa11   :  { %2441 = dma.vmem_to_hbm [thread:$0]  %s2437_s7, 32, %s2439_s24, [#allocation4]  }
 0xa12   :  { %3544 = dma.done.wait [#allocation4], 32  }
 0xa13   :  { %3545 = vsyncadd [#allocation4], 4294967264 }
 0xa14   :  { %2446 = vsyncpa [#allocation3], 1 }
 0xa15   :  { %2447 = vsyncpa [#allocation6], 1 }
 0xa16   :  { %2448 = vsyncpa [#allocation9], 1 }
 0xa17   :  { %2449 = vsyncpa [#allocation12], 1 }
 0xa18   :  { %2450 = vsyncpa [#allocation15], 1 }
 0xa19   :  { %2451 = vsyncpa [#allocation4], 1 }

</bundles_post_ra>
